<compile_context>
chip_gen: v5e
topology: v5e:2x2
jax: 0.10.0
libtpu: 0.0.40
codegen_flags: <defaults>
</compile_context>

<pallas_src>
import functools

import jax
import jax.numpy as jnp
from jax.experimental import pallas as pl
from jax.experimental.pallas import tpu as pltpu


def _g2_gnn_kernel(x_ref, adjn_ref, adj_ref, deg_ref, inv_deg_ref,
                   w_enc_ref, b_enc_ref,
                   w_cg_ref, b_cg_ref,
                   w_dec_ref, b_dec_ref,
                   out_ref, *, nlayers, p):
    f32 = jnp.float32
    bf16 = jnp.bfloat16

    x = x_ref[...]                # [N, F]  bf16
    adjn = adjn_ref[...]          # [N, N]  bf16 GCN-normalized A_hat
    adj = adj_ref[...]            # [N, N]  bf16 binary adjacency (exact 0/1)
    deg = deg_ref[...]            # [N, 1]  f32 out-degree (computed in wrapper, R3)
    inv_deg = inv_deg_ref[...]    # [N, 1]  f32 1/deg (0 where deg == 0)

    w_enc = w_enc_ref[...]        # [F, H]  bf16
    w_cg = w_cg_ref[...]          # [H, 2H] bf16  (w_conv | w_gg fused, R1)
    w_dec = w_dec_ref[...]        # [H, C]  bf16
    b_enc = b_enc_ref[...]        # [1, H]  f32  (sublane-broadcast adds, R6)
    b_cg = b_cg_ref[...]          # [1, 2H] f32
    b_dec = b_dec_ref[...]        # [1, C]  f32

    # encoder: h = relu(x @ W_enc + b_enc)
    h = jnp.maximum(jnp.dot(x, w_enc, preferred_element_type=f32) + b_enc, 0.0)
    n, nhid = h.shape

    for _ in range(nlayers):
        # shared propagation s = A_hat @ h, reused by conv and gate branches
        # ((A@h)@W == A@(h@W) associativity); bf16 operands, f32 accumulation.
        s = jnp.dot(adjn, h.astype(bf16), preferred_element_type=f32)          # [N, H]

        # fused conv/gate weight matmul: one MXU pass over [H, 2H] (R1, R4)
        y = jnp.maximum(
            jnp.dot(s.astype(bf16), w_cg, preferred_element_type=f32) + b_cg, 0.0)
        x_agg = y[:, :nhid]                                                    # conv branch
        x_gg = y[:, nhid:]                                                     # gate branch

        if p == 2.0:
            # Gate as matmul, with a_sq fused into the adjacency matmul (R2):
            #   adj @ [x_gg | sq]  ->  a_x = [:, :H],  a_sq = [:, H:H+1]
            sq = jnp.sum(x_gg * x_gg, axis=-1, keepdims=True)                  # [N, 1]
            xs = jnp.concatenate([x_gg, sq], axis=-1).astype(bf16)             # [N, H+1]
            a = jnp.dot(adj, xs, preferred_element_type=f32)                   # [N, H+1]
            a_x = a[:, :nhid]
            a_sq = a[:, nhid:nhid + 1]
            cross = jnp.sum(x_gg * a_x, axis=-1, keepdims=True)                # [N, 1]
            gg_sum = jnp.maximum(deg * sq + a_sq - 2.0 * cross, 0.0)           # clamp cancellation
        else:
            # Generic-p fallback: j-tiled row panels instead of a full [N, N, H]
            # rank-3 intermediate (R7).
            # TODO(synk): path is only traced for p != 2; not perf-tuned.
            tb = 128 if n >= 128 else n
            gg_sum = jnp.zeros((n, 1), f32)
            for j0 in range(0, n, tb):
                jb = min(tb, n - j0)
                xj = x_gg[j0:j0 + jb, :]                                       # [jb, H]
                diff = jnp.abs(x_gg[:, None, :] - xj[None, :, :])              # [N, jb, H]
                if float(p) == int(p) and 1 <= int(p) <= 4:
                    dp = diff
                    for _ in range(int(p) - 1):
                        dp = dp * diff
                else:
                    dp = diff ** p
                d = jnp.sum(dp, axis=-1)                                       # [N, jb]
                gg_sum = gg_sum + jnp.sum(
                    adj[:, j0:j0 + jb].astype(f32) * d, axis=-1, keepdims=True)

        tau = jnp.tanh(gg_sum * inv_deg)                                       # [N, 1]
        # convex combination: h <- (1 - tau) * h + tau * x_agg
        h = h + tau * (x_agg - h)

    # decoder
    out_ref[...] = (jnp.dot(h.astype(bf16), w_dec, preferred_element_type=f32) + b_dec)


def _vmem_limit_bytes():
    """Per-generation VMEM limit: physical capacity minus ~16 MiB headroom (R5)."""
    mib = 1024 * 1024
    try:
        cap = int(getattr(pltpu.get_tpu_info(), "vmem_capacity_bytes"))
        return int(max(32 * mib, min(cap - 16 * mib, 100 * mib)))
    except Exception:
        return 48 * mib   # safe on all generations (incl. 64 MiB v7x)


def g2_gnn_forward(x, adj_norm, adj, params, *, nlayers=2, p=2.0):
    n_nodes = x.shape[0]
    nclass = params["w_dec"].shape[1]
    bf16 = jnp.bfloat16

    # scalar-ish precomputation in the wrapper (f32, exact) — R3
    deg = jnp.sum(adj, axis=-1, keepdims=True).astype(jnp.float32)
    inv_deg = jnp.where(deg > 0, 1.0 / jnp.maximum(deg, 1.0), 0.0)

    # fuse conv/gate weights & biases — R1
    w_cg = jnp.concatenate([params["w_conv"], params["w_gg"]], axis=1)
    b_cg = jnp.concatenate([params["b_conv"], params["b_gg"]], axis=1)

    kernel = functools.partial(_g2_gnn_kernel, nlayers=nlayers, p=p)
    vmem = pl.BlockSpec(memory_space=pltpu.MemorySpace.VMEM)

    # bf16 operands for every MXU matmul (exact for the 0/1 adj) — R4
    args = (x.astype(bf16),
            adj_norm.astype(bf16),
            adj.astype(bf16),
            deg, inv_deg,
            params["w_enc"].astype(bf16), params["b_enc"],
            w_cg.astype(bf16), b_cg,
            params["w_dec"].astype(bf16), params["b_dec"])

    return pl.pallas_call(
        kernel,
        out_shape=jax.ShapeDtypeStruct((n_nodes, nclass), jnp.float32),
        in_specs=[vmem] * len(args),
        out_specs=vmem,
        compiler_params=pltpu.CompilerParams(vmem_limit_bytes=_vmem_limit_bytes()),
    )(*args)


def _reference_f32(x, adj_norm, adj, params, *, nlayers, p):
    """Pure-f32 JAX reference mirroring the PyTorch forward (original pairwise gate)."""
    h = jnp.maximum(x @ params["w_enc"] + params["b_enc"], 0.0)
    deg = jnp.sum(adj, axis=-1, keepdims=True)
    for _ in range(nlayers):
        x_agg = jnp.maximum(adj_norm @ (h @ params["w_conv"]) + params["b_conv"], 0.0)
        x_gg = jnp.maximum(adj_norm @ (h @ params["w_gg"]) + params["b_gg"], 0.0)
        d = jnp.sum(jnp.abs(x_gg[:, None, :] - x_gg[None, :, :]) ** p, axis=-1)
        gg = jnp.where(deg > 0,
                       jnp.sum(adj * d, axis=-1, keepdims=True) / jnp.maximum(deg, 1.0),
                       0.0)
        tau = jnp.tanh(gg)
        h = (1.0 - tau) * h + tau * x_agg
    return h @ params["w_dec"] + params["b_dec"]


def _reference_mixed(x, adj_norm, adj, params, *, nlayers, p):
    """Plain-JAX mirror of the kernel's optimized math (bf16 operands, fused weight
    matmul, fused adj@[x_gg|sq] gate). Tight bug check for the kernel."""
    assert p == 2.0
    bf16, f32 = jnp.bfloat16, jnp.float32
    xb = x.astype(bf16)
    adjn = adj_norm.astype(bf16)
    adjb = adj.astype(bf16)
    w_enc = params["w_enc"].astype(bf16)
    w_cg = jnp.concatenate([params["w_conv"], params["w_gg"]], axis=1).astype(bf16)
    b_cg = jnp.concatenate([params["b_conv"], params["b_gg"]], axis=1)
    w_dec = params["w_dec"].astype(bf16)
    deg = jnp.sum(adj, axis=-1, keepdims=True)
    inv_deg = jnp.where(deg > 0, 1.0 / jnp.maximum(deg, 1.0), 0.0)

    h = jnp.maximum(jnp.dot(xb, w_enc, preferred_element_type=f32) + params["b_enc"], 0.0)
    H = h.shape[1]
    for _ in range(nlayers):
        s = jnp.dot(adjn, h.astype(bf16), preferred_element_type=f32)
        y = jnp.maximum(jnp.dot(s.astype(bf16), w_cg, preferred_element_type=f32) + b_cg, 0.0)
        x_agg, x_gg = y[:, :H], y[:, H:]
        sq = jnp.sum(x_gg * x_gg, axis=-1, keepdims=True)
        xs = jnp.concatenate([x_gg, sq], axis=-1).astype(bf16)
        a = jnp.dot(adjb, xs, preferred_element_type=f32)
        a_x, a_sq = a[:, :H], a[:, H:H + 1]
        cross = jnp.sum(x_gg * a_x, axis=-1, keepdims=True)
        tau = jnp.tanh(jnp.maximum(deg * sq + a_sq - 2.0 * cross, 0.0) * inv_deg)
        h = h + tau * (x_agg - h)
    return jnp.dot(h.astype(bf16), w_dec, preferred_element_type=f32) + params["b_dec"]


if __name__ == "__main__":
    N, F, H, C = 64, 32, 32, 8          # nodes, nfeat, nhid, nclass
    NLAYERS, P = 2, 2.0

    key = jax.random.PRNGKey(0)
    keys = jax.random.split(key, 8)

    # node features
    x = jax.random.normal(keys[0], (N, F), dtype=jnp.float32)

    # random undirected graph (no self loops in the edge list)
    a = (jax.random.uniform(keys[1], (N, N)) < 0.12).astype(jnp.float32)
    adj = jnp.maximum(a, a.T) * (1.0 - jnp.eye(N, dtype=jnp.float32))

    # GCN normalization with self loops: D^{-1/2}(A+I)D^{-1/2}
    a_hat = adj + jnp.eye(N, dtype=jnp.float32)
    d_inv_sqrt = 1.0 / jnp.sqrt(jnp.sum(a_hat, axis=-1))
    adj_norm = a_hat * d_inv_sqrt[:, None] * d_inv_sqrt[None, :]

    def init_linear(k, fan_in, fan_out):
        lim = 1.0 / jnp.sqrt(jnp.float32(fan_in))
        kw, kb = jax.random.split(k)
        w = jax.random.uniform(kw, (fan_in, fan_out), jnp.float32, -lim, lim)
        b = jax.random.uniform(kb, (1, fan_out), jnp.float32, -lim, lim)
        return w, b

    w_enc, b_enc = init_linear(keys[2], F, H)     # nn.Linear(nfeat, nhid)
    w_conv, b_conv = init_linear(keys[3], H, H)   # GCNConv(nhid, nhid)
    w_gg, b_gg = init_linear(keys[4], H, H)       # GCNConv(nhid, nhid) for the G2 gate
    w_dec, b_dec = init_linear(keys[5], H, C)     # nn.Linear(nhid, nclass)

    params = dict(w_enc=w_enc, b_enc=b_enc,
                  w_conv=w_conv, b_conv=b_conv,
                  w_gg=w_gg, b_gg=b_gg,
                  w_dec=w_dec, b_dec=b_dec)

    out = g2_gnn_forward(x, adj_norm, adj, params, nlayers=NLAYERS, p=P)
    out = jax.block_until_ready(out)
    assert out.shape == (N, C)

    # Tight bug check: kernel vs. a JAX mirror of its own (bf16 / fused / reformulated) math.
    ref_mixed = _reference_mixed(x, adj_norm, adj, params, nlayers=NLAYERS, p=P)
    assert jnp.allclose(out, ref_mixed, atol=5e-3, rtol=5e-3), \
        "mismatch vs mixed-precision reference"

    # Semantic check: kernel vs. the pure-f32 original-formulation reference
    # (tolerance accounts for bf16 operands + gate reformulation rounding).
    ref_f32 = _reference_f32(x, adj_norm, adj, params, nlayers=NLAYERS, p=P)
    assert jnp.allclose(out, ref_f32, atol=1e-1, rtol=1e-1), "mismatch vs f32 reference"

    print("KERNEL_OK")
</pallas_src>

<mosaic_0001>
module attributes {stable_mosaic.version = 11 : i64} {
  func.func @_g2_gnn_kernel(%arg0: memref<64x32xbf16, #tpu.memory_space<vmem>>, %arg1: memref<64x64xbf16, #tpu.memory_space<vmem>>, %arg2: memref<64x64xbf16, #tpu.memory_space<vmem>>, %arg3: memref<64x1xf32, #tpu.memory_space<vmem>>, %arg4: memref<64x1xf32, #tpu.memory_space<vmem>>, %arg5: memref<32x32xbf16, #tpu.memory_space<vmem>>, %arg6: memref<1x32xf32, #tpu.memory_space<vmem>>, %arg7: memref<32x64xbf16, #tpu.memory_space<vmem>>, %arg8: memref<1x64xf32, #tpu.memory_space<vmem>>, %arg9: memref<32x8xbf16, #tpu.memory_space<vmem>>, %arg10: memref<1x8xf32, #tpu.memory_space<vmem>>, %arg11: memref<64x8xf32, #tpu.memory_space<vmem>>) attributes {dimension_semantics = [], scalar_prefetch = 0 : i64, scratch_operands = 0 : i64, tpu.core_type = #tpu.core_type<tc>} {
    %c0 = arith.constant 0 : index
    %c0_0 = arith.constant 0 : index
    %0 = vector.load %arg0[%c0, %c0_0] : memref<64x32xbf16, #tpu.memory_space<vmem>>, vector<64x32xbf16>
    %c0_1 = arith.constant 0 : index
    %c0_2 = arith.constant 0 : index
    %1 = vector.load %arg1[%c0_1, %c0_2] : memref<64x64xbf16, #tpu.memory_space<vmem>>, vector<64x64xbf16>
    %c0_3 = arith.constant 0 : index
    %c0_4 = arith.constant 0 : index
    %2 = vector.load %arg2[%c0_3, %c0_4] : memref<64x64xbf16, #tpu.memory_space<vmem>>, vector<64x64xbf16>
    %c0_5 = arith.constant 0 : index
    %c0_6 = arith.constant 0 : index
    %3 = vector.load %arg3[%c0_5, %c0_6] : memref<64x1xf32, #tpu.memory_space<vmem>>, vector<64x1xf32>
    %c0_7 = arith.constant 0 : index
    %c0_8 = arith.constant 0 : index
    %4 = vector.load %arg4[%c0_7, %c0_8] : memref<64x1xf32, #tpu.memory_space<vmem>>, vector<64x1xf32>
    %c0_9 = arith.constant 0 : index
    %c0_10 = arith.constant 0 : index
    %5 = vector.load %arg5[%c0_9, %c0_10] : memref<32x32xbf16, #tpu.memory_space<vmem>>, vector<32x32xbf16>
    %c0_11 = arith.constant 0 : index
    %c0_12 = arith.constant 0 : index
    %6 = vector.load %arg7[%c0_11, %c0_12] : memref<32x64xbf16, #tpu.memory_space<vmem>>, vector<32x64xbf16>
    %c0_13 = arith.constant 0 : index
    %c0_14 = arith.constant 0 : index
    %7 = vector.load %arg9[%c0_13, %c0_14] : memref<32x8xbf16, #tpu.memory_space<vmem>>, vector<32x8xbf16>
    %c0_15 = arith.constant 0 : index
    %c0_16 = arith.constant 0 : index
    %8 = vector.load %arg6[%c0_15, %c0_16] : memref<1x32xf32, #tpu.memory_space<vmem>>, vector<1x32xf32>
    %c0_17 = arith.constant 0 : index
    %c0_18 = arith.constant 0 : index
    %9 = vector.load %arg8[%c0_17, %c0_18] : memref<1x64xf32, #tpu.memory_space<vmem>>, vector<1x64xf32>
    %c0_19 = arith.constant 0 : index
    %c0_20 = arith.constant 0 : index
    %10 = vector.load %arg10[%c0_19, %c0_20] : memref<1x8xf32, #tpu.memory_space<vmem>>, vector<1x8xf32>
    %cst = arith.constant dense<0.000000e+00> : vector<64x32xf32>
    %11 = tpu.matmul %0, %5, %cst {dimension_numbers = #tpu.dot_dimension_numbers<[1], [0], [0], [1], [0, 0, 1, 1], [], []>} : vector<64x32xbf16>, vector<32x32xbf16>, vector<64x32xf32> -> vector<64x32xf32>
    %12 = vector.broadcast %8 : vector<1x32xf32> to vector<64x32xf32>
    %13 = arith.addf %11, %12 : vector<64x32xf32>
    %cst_21 = arith.constant 0.000000e+00 : f32
    %14 = vector.broadcast %cst_21 : f32 to vector<64x32xf32>
    %15 = arith.maximumf %13, %14 : vector<64x32xf32>
    %16 = arith.truncf %15 : vector<64x32xf32> to vector<64x32xbf16>
    %cst_22 = arith.constant dense<0.000000e+00> : vector<64x32xf32>
    %17 = tpu.matmul %1, %16, %cst_22 {dimension_numbers = #tpu.dot_dimension_numbers<[1], [0], [0], [1], [0, 0, 1, 1], [], []>} : vector<64x64xbf16>, vector<64x32xbf16>, vector<64x32xf32> -> vector<64x32xf32>
    %18 = arith.truncf %17 : vector<64x32xf32> to vector<64x32xbf16>
    %cst_23 = arith.constant dense<0.000000e+00> : vector<64x64xf32>
    %19 = tpu.matmul %18, %6, %cst_23 {dimension_numbers = #tpu.dot_dimension_numbers<[1], [0], [0], [1], [0, 0, 1, 1], [], []>} : vector<64x32xbf16>, vector<32x64xbf16>, vector<64x64xf32> -> vector<64x64xf32>
    %20 = vector.broadcast %9 : vector<1x64xf32> to vector<64x64xf32>
    %21 = arith.addf %19, %20 : vector<64x64xf32>
    %cst_24 = arith.constant 0.000000e+00 : f32
    %22 = vector.broadcast %cst_24 : f32 to vector<64x64xf32>
    %23 = arith.maximumf %21, %22 : vector<64x64xf32>
    %24 = vector.extract_strided_slice %23 {offsets = [0, 0], sizes = [64, 32], strides = [1, 1]} : vector<64x64xf32> to vector<64x32xf32>
    %25 = vector.extract_strided_slice %23 {offsets = [0, 32], sizes = [64, 32], strides = [1, 1]} : vector<64x64xf32> to vector<64x32xf32>
    %26 = arith.mulf %25, %25 : vector<64x32xf32>
    %cst_25 = arith.constant dense<0.000000e+00> : vector<64xf32>
    %27 = vector.multi_reduction <add>, %26, %cst_25 [1] : vector<64x32xf32> to vector<64xf32>
    %28 = vector.shape_cast %27 : vector<64xf32> to vector<64x1xf32>
    %29 = tpu.concatenate %25, %28 in 1 : vector<64x32xf32>, vector<64x1xf32> -> vector<64x33xf32>
    %30 = arith.truncf %29 : vector<64x33xf32> to vector<64x33xbf16>
    %cst_26 = arith.constant dense<0.000000e+00> : vector<64x33xf32>
    %31 = tpu.matmul %2, %30, %cst_26 {dimension_numbers = #tpu.dot_dimension_numbers<[1], [0], [0], [1], [0, 0, 1, 1], [], []>} : vector<64x64xbf16>, vector<64x33xbf16>, vector<64x33xf32> -> vector<64x33xf32>
    %32 = vector.extract_strided_slice %31 {offsets = [0, 0], sizes = [64, 32], strides = [1, 1]} : vector<64x33xf32> to vector<64x32xf32>
    %33 = vector.extract_strided_slice %31 {offsets = [0, 32], sizes = [64, 1], strides = [1, 1]} : vector<64x33xf32> to vector<64x1xf32>
    %34 = arith.mulf %25, %32 : vector<64x32xf32>
    %cst_27 = arith.constant dense<0.000000e+00> : vector<64xf32>
    %35 = vector.multi_reduction <add>, %34, %cst_27 [1] : vector<64x32xf32> to vector<64xf32>
    %36 = vector.shape_cast %35 : vector<64xf32> to vector<64x1xf32>
    %37 = arith.mulf %3, %28 : vector<64x1xf32>
    %38 = arith.addf %37, %33 : vector<64x1xf32>
    %cst_28 = arith.constant 2.000000e+00 : f32
    %39 = vector.broadcast %cst_28 : f32 to vector<64x1xf32>
    %40 = arith.mulf %39, %36 : vector<64x1xf32>
    %41 = arith.subf %38, %40 : vector<64x1xf32>
    %cst_29 = arith.constant 0.000000e+00 : f32
    %42 = vector.broadcast %cst_29 : f32 to vector<64x1xf32>
    %43 = arith.maximumf %41, %42 : vector<64x1xf32>
    %44 = arith.mulf %43, %4 : vector<64x1xf32>
    %45 = math.tanh %44 : vector<64x1xf32>
    %46 = arith.subf %24, %15 : vector<64x32xf32>
    %47 = vector.broadcast %45 : vector<64x1xf32> to vector<64x32xf32>
    %48 = arith.mulf %47, %46 : vector<64x32xf32>
    %49 = arith.addf %15, %48 : vector<64x32xf32>
    %50 = arith.truncf %49 : vector<64x32xf32> to vector<64x32xbf16>
    %cst_30 = arith.constant dense<0.000000e+00> : vector<64x32xf32>
    %51 = tpu.matmul %1, %50, %cst_30 {dimension_numbers = #tpu.dot_dimension_numbers<[1], [0], [0], [1], [0, 0, 1, 1], [], []>} : vector<64x64xbf16>, vector<64x32xbf16>, vector<64x32xf32> -> vector<64x32xf32>
    %52 = arith.truncf %51 : vector<64x32xf32> to vector<64x32xbf16>
    %cst_31 = arith.constant dense<0.000000e+00> : vector<64x64xf32>
    %53 = tpu.matmul %52, %6, %cst_31 {dimension_numbers = #tpu.dot_dimension_numbers<[1], [0], [0], [1], [0, 0, 1, 1], [], []>} : vector<64x32xbf16>, vector<32x64xbf16>, vector<64x64xf32> -> vector<64x64xf32>
    %54 = vector.broadcast %9 : vector<1x64xf32> to vector<64x64xf32>
    %55 = arith.addf %53, %54 : vector<64x64xf32>
    %cst_32 = arith.constant 0.000000e+00 : f32
    %56 = vector.broadcast %cst_32 : f32 to vector<64x64xf32>
    %57 = arith.maximumf %55, %56 : vector<64x64xf32>
    %58 = vector.extract_strided_slice %57 {offsets = [0, 0], sizes = [64, 32], strides = [1, 1]} : vector<64x64xf32> to vector<64x32xf32>
    %59 = vector.extract_strided_slice %57 {offsets = [0, 32], sizes = [64, 32], strides = [1, 1]} : vector<64x64xf32> to vector<64x32xf32>
    %60 = arith.mulf %59, %59 : vector<64x32xf32>
    %cst_33 = arith.constant dense<0.000000e+00> : vector<64xf32>
    %61 = vector.multi_reduction <add>, %60, %cst_33 [1] : vector<64x32xf32> to vector<64xf32>
    %62 = vector.shape_cast %61 : vector<64xf32> to vector<64x1xf32>
    %63 = tpu.concatenate %59, %62 in 1 : vector<64x32xf32>, vector<64x1xf32> -> vector<64x33xf32>
    %64 = arith.truncf %63 : vector<64x33xf32> to vector<64x33xbf16>
    %cst_34 = arith.constant dense<0.000000e+00> : vector<64x33xf32>
    %65 = tpu.matmul %2, %64, %cst_34 {dimension_numbers = #tpu.dot_dimension_numbers<[1], [0], [0], [1], [0, 0, 1, 1], [], []>} : vector<64x64xbf16>, vector<64x33xbf16>, vector<64x33xf32> -> vector<64x33xf32>
    %66 = vector.extract_strided_slice %65 {offsets = [0, 0], sizes = [64, 32], strides = [1, 1]} : vector<64x33xf32> to vector<64x32xf32>
    %67 = vector.extract_strided_slice %65 {offsets = [0, 32], sizes = [64, 1], strides = [1, 1]} : vector<64x33xf32> to vector<64x1xf32>
    %68 = arith.mulf %59, %66 : vector<64x32xf32>
    %cst_35 = arith.constant dense<0.000000e+00> : vector<64xf32>
    %69 = vector.multi_reduction <add>, %68, %cst_35 [1] : vector<64x32xf32> to vector<64xf32>
    %70 = vector.shape_cast %69 : vector<64xf32> to vector<64x1xf32>
    %71 = arith.mulf %3, %62 : vector<64x1xf32>
    %72 = arith.addf %71, %67 : vector<64x1xf32>
    %cst_36 = arith.constant 2.000000e+00 : f32
    %73 = vector.broadcast %cst_36 : f32 to vector<64x1xf32>
    %74 = arith.mulf %73, %70 : vector<64x1xf32>
    %75 = arith.subf %72, %74 : vector<64x1xf32>
    %cst_37 = arith.constant 0.000000e+00 : f32
    %76 = vector.broadcast %cst_37 : f32 to vector<64x1xf32>
    %77 = arith.maximumf %75, %76 : vector<64x1xf32>
    %78 = arith.mulf %77, %4 : vector<64x1xf32>
    %79 = math.tanh %78 : vector<64x1xf32>
    %80 = arith.subf %58, %49 : vector<64x32xf32>
    %81 = vector.broadcast %79 : vector<64x1xf32> to vector<64x32xf32>
    %82 = arith.mulf %81, %80 : vector<64x32xf32>
    %83 = arith.addf %49, %82 : vector<64x32xf32>
    %84 = arith.truncf %83 : vector<64x32xf32> to vector<64x32xbf16>
    %cst_38 = arith.constant dense<0.000000e+00> : vector<64x8xf32>
    %85 = tpu.matmul %84, %7, %cst_38 {dimension_numbers = #tpu.dot_dimension_numbers<[1], [0], [0], [1], [0, 0, 1, 1], [], []>} : vector<64x32xbf16>, vector<32x8xbf16>, vector<64x8xf32> -> vector<64x8xf32>
    %86 = vector.broadcast %10 : vector<1x8xf32> to vector<64x8xf32>
    %87 = arith.addf %85, %86 : vector<64x8xf32>
    %c0_39 = arith.constant 0 : index
    %c0_40 = arith.constant 0 : index
    %88 = vector.load %arg11[%c0_39, %c0_40] : memref<64x8xf32, #tpu.memory_space<vmem>>, vector<64x8xf32>
    tpu.vector_store %arg11[%c0_39, %c0_40], %87 {strides = array<i32>} : memref<64x8xf32, #tpu.memory_space<vmem>>, vector<64x8xf32>,
    return
  }
}

</mosaic_0001>

<bundles_post_ra>
// kernel: tpu_custom_call.1
= control target key start
LH: loop header
LB: loop body
LE: loop exit
PB: predicated region body
PF: predicated region fallthrough
CT: control target
= control target key end

     0   :  { %vm129_vm0 = vcmask 261120   ;;  %vm203_vm1 = vcmask 523264   ;;  %s1461_s21 = smov 96   ;;  %s1462_s28 = smov 32   ;;  %vm1245_vm2 = vcmask 64512   ;;  %s2194_s5 = inlined_call_operand.vmem [shape: bf16[32,32], index: 5, kind: input, shape index: {}]   ;;  %s2195_s6 = inlined_call_operand.vmem [shape: f32[1,32], index: 6, kind: input, shape index: {}]   ;;  %s2196_s0 = inlined_call_operand.vmem [shape: bf16[64,32], index: 0, kind: input, shape index: {}]   ;;  %s2197_s1 = inlined_call_operand.vmem [shape: bf16[64,64], index: 1, kind: input, shape index: {}]   ;;  %s2198_s8 = inlined_call_operand.vmem [shape: f32[1,64], index: 8, kind: input, shape index: {}]   ;;  %s2199_s7 = inlined_call_operand.vmem [shape: bf16[32,64], index: 7, kind: input, shape index: {}]   ;;  %s2200_s2 = inlined_call_operand.vmem [shape: bf16[64,64], index: 2, kind: input, shape index: {}]   ;;  %s2201_s3 = inlined_call_operand.vmem [shape: f32[64,1], index: 3, kind: input, shape index: {}]   ;;  %s2202_s4 = inlined_call_operand.vmem [shape: f32[64,1], index: 4, kind: input, shape index: {}]   ;;  %s2203_s9 = inlined_call_operand.vmem [shape: bf16[32,8], index: 9, kind: input, shape index: {}]   ;;  %s2204_s10 = inlined_call_operand.vmem [shape: f32[1,8], index: 10, kind: input, shape index: {}]   ;;  %s2205_s11 = inlined_call_operand.vmem [shape: f32[64,8], index: 11, kind: output, shape index: {}]  }
   0x1   :  { %v1375_v0 = vld [vmem:[%s2194_s5 + $0x8] sm:$0xff]  ;;  %v1374_v1 = vld [vmem:[%s2194_s5] sm:$0xff]  ;;  %v1364_v4 = vld [vmem:[%s2196_s0 + $0x10] sm:$0xff] }
   0x2   :  { %148 = vmatpush.bf16.msra.mxu0 %v1375_v0  ;;  %v1362_v2 = vld [vmem:[%s2196_s0] sm:$0xff]  ;;  %v1363_v3 = vld [vmem:[%s2196_s0 + $0x8] sm:$0xff]  ;;  %v1365_v5 = vld [vmem:[%s2196_s0 + $0x18] sm:$0xff] }
   0x3   :  { %v1426_v6 = vld [vmem:[%s2195_s6] ss:$0 sm:$0xff]  ;;  %v1583_v36 = vld [vmem:[%s2197_s1 + $0x8] sm:$0xff]  ;;  %v1590_v37 = vld [vmem:[%s2197_s1 + $0x10] sm:$0xff] }
   0x4   :  { %v1576_v35 = vld [vmem:[%s2197_s1] sm:$0xff]  ;;  %v1597_v38 = vld [vmem:[%s2197_s1 + $0x18] sm:$0xff]  ;;  %v1377_v39 = vld [vmem:[%s2199_s7 + $0x8] sm:$0xff] }
   0x5   :  { %282 = vmatpush.bf16.msra.mxu2 %v1377_v39  ;;  %v1376_v40 = vld [vmem:[%s2199_s7] sm:$0xff] }
   0x6   :  { %149 = vmatpush.bf16.msra.mxu0 %v1374_v1  ;;  %v1614_v53 = vld [vmem:[%s2198_s8] ss:$0 sm:$0xff] }
   0x9   :  { %1282 = vmatmul.msk.bf16.vlgmr.msra.gmra.mxu0 %vm129_vm0, %v1362_v2  ;;  %283 = vmatpush.bf16.msra.mxu2 %v1376_v40 }
   0xd   :  { %777 = vmatpush.bf16.msrb.mxu2 %v1377_v39 }
  0x11   :  { %778 = vmatpush.bf16.msrb.mxu2 %v1376_v40 }
  0x19   :  { %1283 = vmatmul.msk.bf16.gmra.mxu0 %vm129_vm0, %v1363_v3 }
  0x29   :  { %1284 = vmatmul.msk.bf16.gmra.mxu0 %vm129_vm0, %v1364_v4 }
  0x39   :  { %1285 = vmatmul.msk.bf16.gmra.mxu0 %vm129_vm0, %v1365_v5 }
  0x86   :  { %v151_v7 = vpop.f32.mrf.mxu0 }
  0x87   :  { %v152_v8 = vadd.f32 %v1426_v6, %v151_v7 }
  0x89   :  { %v1569_v33 = vmax.f32 %v152_v8, 0.0 }
  0x8e   :  { %v153_v9 = vpop.f32.mrf.mxu0 }
  0x8f   :  { %v154_v27 = vadd.f32 %v1426_v6, %v153_v9 }
  0x91   :  { %v1565_v31 = vmax.f32 %v154_v27, 0.0 }
  0x93   :  { %v179_v34 = vpack.c.bf16 %v1565_v31, %v1569_v33 }
  0x96   :  { %v156_v10 = vpop.f32.mrf.mxu0 }
  0x97   :  { %v157_v25 = vadd.f32 %v1426_v6, %v156_v10 }
  0x99   :  { %v1563_v30 = vmax.f32 %v157_v25, 0.0 }
  0x9e   :  { %v158_v11 = vpop.f32.mrf.mxu0 }
  0x9f   :  { %v159_v22 = vadd.f32 %v1426_v6, %v158_v11 }
  0xa1   :  { %v1559_v28 = vmax.f32 %v159_v22, 0.0 }
  0xa3   :  { %v180_v32 = vpack.c.bf16 %v1559_v28, %v1563_v30 }
  0xa6   :  { %v161_v12 = vpop.f32.mrf.mxu0 }
  0xa7   :  { %v162_v19 = vadd.f32 %v1426_v6, %v161_v12 }
  0xa9   :  { %v1557_v26 = vmax.f32 %v162_v19, 0.0 }
  0xae   :  { %v163_v13 = vpop.f32.mrf.mxu0 }
  0xaf   :  { %v164_v17 = vadd.f32 %v1426_v6, %v163_v13 }
  0xb1   :  { %v1553_v23 = vmax.f32 %v164_v17, 0.0 }
  0xb3   :  { %v181_v29 = vpack.c.bf16 %v1553_v23, %v1557_v26 }
  0xb6   :  { %v166_v14 = vpop.f32.mrf.mxu0 }
  0xb7   :  { %v167_v15 = vadd.f32 %v1426_v6, %v166_v14 }
  0xb9   :  { %v1549_v20 = vmax.f32 %v167_v15, 0.0 }
  0xbe   :  { %v168_v16 = vpop.f32.mrf.mxu0 }
  0xbf   :  { %v169_v18 = vadd.f32 %v1426_v6, %v168_v16 }
  0xc1   :  { %v1551_v21 = vmax.f32 %v169_v18, 0.0 }
  0xc3   :  { %v182_v24 = vpack.c.bf16 %v1551_v21, %v1549_v20 }
  0xc5   :  { %220 = vmatpush.bf16.msra.mxu1 %v182_v24 }
  0xc9   :  { %221 = vmatpush.bf16.msra.mxu1 %v181_v29 }
  0xcd   :  { %222 = vmatpush.bf16.msra.mxu1 %v180_v32 }
  0xd1   :  { %223 = vmatpush.bf16.msra.mxu1 %v179_v34 }
  0xd4   :  { %1302 = vmatmul.msk.bf16.vlgmr.msra.gmra.mxu1 %vm203_vm1, %v1576_v35 }
  0xe4   :  { %1303 = vmatmul.msk.bf16.gmra.mxu1 %vm203_vm1, %v1583_v36 }
  0xf4   :  { %1304 = vmatmul.msk.bf16.gmra.mxu1 %vm203_vm1, %v1590_v37 }
 0x104   :  { %1305 = vmatmul.msk.bf16.gmra.mxu1 %vm203_vm1, %v1597_v38 }
 0x151   :  { %v225_v41 = vpop.f32.mrf.mxu1 }
 0x159   :  { %v227_v42 = vpop.f32.mrf.mxu1 }
 0x15a   :  { %v245_v43 = vpack.c.bf16 %v227_v42, %v225_v41 }
 0x15c   :  { %1314 = vmatmul.msk.bf16.vlgmr.msra.gmra.mxu2 %vm129_vm0, %v245_v43 }
 0x161   :  { %v230_v44 = vpop.f32.mrf.mxu1 }
 0x169   :  { %v232_v45 = vpop.f32.mrf.mxu1 }
 0x16a   :  { %v246_v46 = vpack.c.bf16 %v232_v45, %v230_v44 }
 0x16c   :  { %1315 = vmatmul.msk.bf16.gmra.mxu2 %vm129_vm0, %v246_v46 }
 0x171   :  { %v235_v47 = vpop.f32.mrf.mxu1 }
 0x179   :  { %v237_v48 = vpop.f32.mrf.mxu1 }
 0x17a   :  { %v247_v49 = vpack.c.bf16 %v237_v48, %v235_v47 }
 0x17c   :  { %1316 = vmatmul.msk.bf16.gmra.mxu2 %vm129_vm0, %v247_v49 }
 0x181   :  { %v240_v50 = vpop.f32.mrf.mxu1 }
 0x189   :  { %v242_v51 = vpop.f32.mrf.mxu1 }
 0x18a   :  { %v248_v52 = vpack.c.bf16 %v242_v51, %v240_v50 }
 0x18c   :  { %1317 = vmatmul.msk.bf16.gmra.mxu2 %vm129_vm0, %v248_v52 }
 0x1df   :  { %v285_v54 = vpop.f32.mrf.mxu2 }
 0x1e0   :  { %v286_v55 = vadd.f32 %v1614_v53, %v285_v54 }
 0x1e2   :  { %v1617_v56 = vmax.f32 %v286_v55, 0.0 }
 0x1e4   :  { %v313_v57 = vmul.f32 %v1617_v56, %v1617_v56 }
 0x1e6   :  { %329 = vrot.lane.b32.xlu0 %v313_v57, %s1461_s21 }
 0x1e7   :  { %v287_v58 = vpop.f32.mrf.mxu2 }
 0x1e8   :  { %v288_v59 = vadd.f32 %v1614_v53, %v287_v58 }
 0x1ea   :  { %v1623_v60 = vmax.f32 %v288_v59, 0.0 }
 0x1ec   :  { %v314_v61 = vmul.f32 %v1623_v60, %v1623_v60  ;;  %v1398_v52 = vpack.i.bf16 %v1623_v60, %v1617_v56 }
 0x1ee   :  { %331 = vrot.lane.b32.xlu1 %v314_v61, %s1461_s21 }
 0x1ef   :  { %v290_v62 = vpop.f32.mrf.mxu2 }
 0x1f0   :  { %v291_v63 = vadd.f32 %v1614_v53, %v290_v62 }
 0x1f2   :  { %v1629_v0 = vmax.f32 %v291_v63, 0.0 }
 0x1f4   :  { %v315_v1 = vmul.f32 %v1629_v0, %v1629_v0 }
 0x1f6   :  { %333 = vrot.lane.b32.xlu2 %v315_v1, %s1461_s21 }
 0x1f7   :  { %v292_v2 = vpop.f32.mrf.mxu2 }
 0x1f8   :  { %v293_v3 = vadd.f32 %v1614_v53, %v292_v2 }
 0x1fa   :  { %v1635_v4 = vmax.f32 %v293_v3, 0.0 }
 0x1fc   :  { %v316_v5 = vmul.f32 %v1635_v4, %v1635_v4  ;;  %v1393_v50 = vpack.i.bf16 %v1635_v4, %v1629_v0 }
 0x1fe   :  { %335 = vrot.lane.b32.xlu2 %v316_v5, %s1461_s21 }
 0x1ff   :  { %v295_v6 = vpop.f32.mrf.mxu2 }
 0x200   :  { %v296_v7 = vadd.f32 %v1614_v53, %v295_v6 }
 0x202   :  { %v1641_v8 = vmax.f32 %v296_v7, 0.0 }
 0x204   :  { %v317_v9 = vmul.f32 %v1641_v8, %v1641_v8 }
 0x206   :  { %337 = vrot.lane.b32.xlu1 %v317_v9, %s1461_s21 }
 0x207   :  { %v297_v10 = vpop.f32.mrf.mxu2 }
 0x208   :  { %v298_v11 = vadd.f32 %v1614_v53, %v297_v10 }
 0x20a   :  { %v1647_v12 = vmax.f32 %v298_v11, 0.0 }
 0x20c   :  { %v318_v13 = vmul.f32 %v1647_v12, %v1647_v12  ;;  %v1388_v51 = vpack.i.bf16 %v1647_v12, %v1641_v8 }
 0x20e   :  { %339 = vrot.lane.b32.xlu1 %v318_v13, %s1461_s21 }
 0x20f   :  { %v300_v14 = vpop.f32.mrf.mxu2 }
 0x210   :  { %v301_v15 = vadd.f32 %v1614_v53, %v300_v14 }
 0x212   :  { %v1653_v16 = vmax.f32 %v301_v15, 0.0 }
 0x214   :  { %v319_v17 = vmul.f32 %v1653_v16, %v1653_v16 }
 0x216   :  { %341 = vrot.lane.b32.xlu0 %v319_v17, %s1461_s21 }
 0x217   :  { %v302_v18 = vpop.f32.mrf.mxu2 }
 0x218   :  { %v303_v19 = vadd.f32 %v1614_v53, %v302_v18 }
 0x21a   :  { %v1659_v22 = vmax.f32 %v303_v19, 0.0 }
 0x21c   :  { %v1383_v24 = vpack.i.bf16 %v1659_v22, %v1653_v16  ;;  %v320_v25 = vmul.f32 %v1659_v22, %v1659_v22 }
 0x21e   :  { %1384 = vrot.lane.b32.xlu1 %v1383_v24, %s1461_s21  ;;  %343 = vrot.lane.b32.xlu0 %v320_v25, %s1461_s21 }
 0x250   :  { %v334_v27 = vpop.permute.xlu2 %333 }
 0x251   :  { %v359_v29 = vsel %vm129_vm0, %v334_v27, 0.0 }
 0x252   :  { %360 = vadd.xlane.f32.xlu0 %v359_v29 }
 0x258   :  { %v336_v32 = vpop.permute.xlu2 %335  ;;  %v330_v39 = vpop.permute.xlu0 %329 }
 0x259   :  { %v362_v34 = vsel %vm129_vm0, %v336_v32, 0.0  ;;  %v353_v40 = vsel %vm129_vm0, %v330_v39, 0.0 }
 0x25a   :  { %363 = vadd.xlane.f32.xlu0 %v362_v34 }
 0x260   :  { %v332_v41 = vpop.permute.xlu1 %331 }
 0x261   :  { %v356_v54 = vsel %vm129_vm0, %v332_v41, 0.0 }
 0x262   :  { %354 = vadd.xlane.f32.xlu0 %v353_v40 }
 0x278   :  { %v338_v42 = vpop.permute.xlu1 %337 }
 0x279   :  { %v365_v43 = vsel %vm129_vm0, %v338_v42, 0.0 }
 0x27a   :  { %366 = vadd.xlane.f32.xlu1 %v365_v43  ;;  %v1719_v43 = vld [vmem:[%s2200_s2] sm:$0xff] }
 0x280   :  { %v340_v44 = vpop.permute.xlu1 %339 }
 0x281   :  { %v368_v45 = vsel %vm129_vm0, %v340_v44, 0.0  ;;  %v1726_v44 = vld [vmem:[%s2200_s2 + $0x8] sm:$0xff] }
 0x282   :  { %369 = vadd.xlane.f32.xlu2 %v368_v45  ;;  %v1733_v45 = vld [vmem:[%s2200_s2 + $0x10] sm:$0xff] }
 0x288   :  { %v342_v46 = vpop.permute.xlu0 %341 }
 0x289   :  { %v371_v47 = vsel %vm129_vm0, %v342_v46, 0.0  ;;  %v1740_v46 = vld [vmem:[%s2200_s2 + $0x18] sm:$0xff] }
 0x28a   :  { %372 = vadd.xlane.f32.xlu2 %v371_v47 }
 0x290   :  { %v344_v48 = vpop.permute.xlu0 %343  ;;  %v1385_v59 = vpop.permute.xlu1 %1384 }
 0x291   :  { %v374_v49 = vsel %vm129_vm0, %v344_v48, 0.0  ;;  %v1387_v1 = vunpack.i.h.bf16 %v1385_v59  ;;  %v1386_v2 = vunpack.i.l.bf16 %v1385_v59 }
 0x292   :  { %375 = vadd.xlane.f32.xlu0 %v374_v49 }
 0x293   :  { %1394 = vrot.lane.b32.xlu1 %v1393_v50, %s1461_s21 }
 0x2a2   :  { %1389 = vrot.lane.b32.xlu2 %v1388_v51, %s1461_s21 }
 0x2a6   :  { %1399 = vrot.lane.b32.xlu0 %v1398_v52, %s1461_s21 }
 0x2c5   :  { %v1684_v55 = vpop.xlane.xlu0 %360 }
 0x2cb   :  { %357 = vadd.xlane.f32.xlu2 %v356_v54 }
 0x2cd   :  { %v1686_v57 = vpop.xlane.xlu0 %363 }
 0x2d5   :  { %v1692_v62 = vpop.xlane.xlu0 %354 }
 0x2ed   :  { %v1694_v63 = vpop.xlane.xlu1 %366 }
 0x2f5   :  { %v1688_v58 = vpop.xlane.xlu2 %369 }
 0x2fd   :  { %v1690_v61 = vpop.xlane.xlu2 %372 }
 0x2fe   :  { %v415_v10 = vsel %vm129_vm0, %v1386_v2, %v1690_v61 }
 0x305   :  { %v1390_v3 = vpop.permute.xlu2 %1389  ;;  %v1395_v5 = vpop.permute.xlu1 %1394 }
 0x306   :  { %v1392_v6 = vunpack.i.h.bf16 %v1390_v3  ;;  %v1391_v7 = vunpack.i.l.bf16 %v1390_v3  ;;  %v1696_v9 = vpop.xlane.xlu0 %375  ;;  %v1397_v14 = vunpack.i.h.bf16 %v1395_v5  ;;  %v1396_v15 = vunpack.i.l.bf16 %v1395_v5 }
 0x307   :  { %v416_v11 = vsel %vm129_vm0, %v1387_v1, %v1696_v9 }
 0x308   :  { %v420_v13 = vpack.c.bf16 %v416_v11, %v415_v10  ;;  %v413_v17 = vsel %vm129_vm0, %v1391_v7, %v1694_v63  ;;  %v414_v18 = vsel %vm129_vm0, %v1392_v6, %v1688_v58  ;;  %v411_v24 = vsel %vm129_vm0, %v1396_v15, %v1684_v55 }
 0x309   :  { %v419_v19 = vpack.c.bf16 %v414_v18, %v413_v17  ;;  %v412_v25 = vsel %vm129_vm0, %v1397_v14, %v1686_v57 }
 0x30a   :  { %457 = vmatpush.bf16.msra.mxu3 %v420_v13  ;;  %v418_v27 = vpack.c.bf16 %v412_v25, %v411_v24  ;;  %v1780_v25 = vld [vmem:[%s2201_s3 + $0x30] sm:$0xff] }
 0x30e   :  { %458 = vmatpush.bf16.msra.mxu3 %v419_v19 }
 0x312   :  { %459 = vmatpush.bf16.msra.mxu3 %v418_v27  ;;  %v584_v27 = vmul.f32 %v1690_v61, %v1780_v25 }
 0x318   :  { %v1400_v29 = vpop.permute.xlu0 %1399 }
 0x319   :  { %v1401_v32 = vunpack.i.l.bf16 %v1400_v29  ;;  %v1402_v34 = vunpack.i.h.bf16 %v1400_v29 }
 0x31b   :  { %v409_v41 = vsel %vm129_vm0, %v1401_v32, %v1692_v62 }
 0x33e   :  { %v1710_v39 = vpop.xlane.xlu2 %357 }
 0x33f   :  { %v410_v40 = vsel %vm129_vm0, %v1402_v34, %v1710_v39 }
 0x340   :  { %v417_v42 = vpack.c.bf16 %v410_v40, %v409_v41 }
 0x342   :  { %460 = vmatpush.bf16.msra.mxu3 %v417_v42 }
 0x345   :  { %1334 = vmatmul.msk.bf16.vlgmr.msra.gmra.mxu3 %vm203_vm1, %v1719_v43 }
 0x355   :  { %1335 = vmatmul.msk.bf16.gmra.mxu3 %vm203_vm1, %v1726_v44 }
 0x365   :  { %1336 = vmatmul.msk.bf16.gmra.mxu3 %vm203_vm1, %v1733_v45 }
 0x375   :  { %1337 = vmatmul.msk.bf16.gmra.mxu3 %vm203_vm1, %v1740_v46 }
 0x3c8   :  { %v1744_v47 = vpop.f32.mrf.mxu3 }
 0x3c9   :  { %490 = vrot.lane.b32.xlu0 %v1744_v47, %s1462_s28 }
 0x3d0   :  { %v1748_v48 = vpop.f32.mrf.mxu3 }
 0x3d1   :  { %492 = vrot.lane.b32.xlu2 %v1748_v48, %s1462_s28 }
 0x3d8   :  { %v467_v49 = vpop.f32.mrf.mxu3 }
 0x3d9   :  { %494 = vrot.lane.b32.xlu0 %v467_v49, %s1462_s28 }
 0x3e0   :  { %v469_v50 = vpop.f32.mrf.mxu3 }
 0x3e1   :  { %496 = vrot.lane.b32.xlu1 %v469_v50, %s1462_s28 }
 0x3e8   :  { %v472_v51 = vpop.f32.mrf.mxu3 }
 0x3e9   :  { %498 = vrot.lane.b32.xlu0 %v472_v51, %s1462_s28 }
 0x3f0   :  { %v474_v52 = vpop.f32.mrf.mxu3 }
 0x3f1   :  { %500 = vrot.lane.b32.xlu1 %v474_v52, %s1462_s28 }
 0x3f8   :  { %v477_v54 = vpop.f32.mrf.mxu3 }
 0x3f9   :  { %502 = vrot.lane.b32.xlu1 %v477_v54, %s1462_s28 }
 0x400   :  { %v479_v59 = vpop.f32.mrf.mxu3 }
 0x401   :  { %504 = vrot.lane.b32.xlu1 %v479_v59, %s1462_s28 }
 0x409   :  { %598 = vrot.lane.b32.xlu1 %v477_v54, %s1461_s21 }
 0x42b   :  { %v493_v1 = vpop.permute.xlu2 %492 }
 0x42c   :  { %v515_v2 = vmul.f32 %v493_v1, %v1623_v60 }
 0x42e   :  { %532 = vrot.lane.b32.xlu1 %v515_v2, %s1461_s21 }
 0x43b   :  { %v491_v3 = vpop.permute.xlu0 %490 }
 0x43c   :  { %v514_v5 = vmul.f32 %v491_v3, %v1617_v56  ;;  %v1798_v3 = vld [vmem:[%s2201_s3 + $0x28] sm:$0xff] }
 0x43e   :  { %530 = vrot.lane.b32.xlu2 %v514_v5, %s1461_s21  ;;  %v583_v5 = vmul.f32 %v1688_v58, %v1798_v3  ;;  %v1463_v58 = vmov 0  }
 0x43f   :  { %1405 = vset.pattern.permute.xlu0 %v1463_v58  ;;  %1403 = vset.pattern.permute.xlu2 %v1463_v58 }
 0x440   :  { %1404 = vset.pattern.permute.xlu1 %v1463_v58  ;;  %v1845_v58 = vld [vmem:[%s2201_s3 + $0x10] sm:$0xff] }
 0x446   :  { %594 = vrot.lane.b32.xlu2 %v472_v51, %s1461_s21 }
 0x44b   :  { %v495_v6 = vpop.permute.xlu0 %494 }
 0x44c   :  { %v516_v7 = vmul.f32 %v495_v6, %v1629_v0 }
 0x44e   :  { %534 = vrot.lane.b32.xlu1 %v516_v7, %s1461_s21 }
 0x453   :  { %v497_v10 = vpop.permute.xlu1 %496 }
 0x454   :  { %v517_v11 = vmul.f32 %v497_v10, %v1635_v4 }
 0x456   :  { %536 = vrot.lane.b32.xlu0 %v517_v11, %s1461_s21 }
 0x45b   :  { %v499_v13 = vpop.permute.xlu0 %498 }
 0x45c   :  { %v518_v14 = vmul.f32 %v499_v13, %v1641_v8 }
 0x45e   :  { %538 = vrot.lane.b32.xlu1 %v518_v14, %s1461_s21 }
 0x463   :  { %v501_v15 = vpop.permute.xlu1 %500 }
 0x464   :  { %v519_v17 = vmul.f32 %v501_v15, %v1647_v12 }
 0x466   :  { %540 = vrot.lane.b32.xlu0 %v519_v17, %s1461_s21 }
 0x46b   :  { %v503_v18 = vpop.permute.xlu1 %502 }
 0x46c   :  { %v520_v19 = vmul.f32 %v503_v18, %v1653_v16 }
 0x46e   :  { %596 = vrot.lane.b32.xlu0 %v474_v52, %s1461_s21  ;;  %542 = vrot.lane.b32.xlu1 %v520_v19, %s1461_s21 }
 0x473   :  { %v505_v24 = vpop.permute.xlu1 %504 }
 0x474   :  { %v521_v32 = vmul.f32 %v505_v24, %v1659_v22 }
 0x476   :  { %590 = vrot.lane.b32.xlu0 %v467_v49, %s1461_s21  ;;  %600 = vrot.lane.b32.xlu1 %v479_v59, %s1461_s21 }
 0x47b   :  { %v599_v29 = vpop.permute.xlu1 %598 }
 0x47c   :  { %v1785_v34 = vadd.f32 %v599_v29, %v584_v27  ;;  %v1811_v27 = vld [vmem:[%s2201_s3 + $0x20] sm:$0xff] }
 0x47e   :  { %592 = vrot.lane.b32.xlu1 %v469_v50, %s1461_s21  ;;  %544 = vrot.lane.b32.xlu0 %v521_v32, %s1461_s21 }
 0x498   :  { %v531_v40 = vpop.permute.xlu2 %530 }
 0x499   :  { %v554_v41 = vsel %vm129_vm0, %v531_v40, 0.0 }
 0x4a0   :  { %v533_v42 = vpop.permute.xlu1 %532  ;;  %v595_v19 = vpop.permute.xlu2 %594 }
 0x4a1   :  { %v557_v2 = vsel %vm129_vm0, %v533_v42, 0.0 }
 0x4a8   :  { %555 = vadd.xlane.f32.xlu0 %v554_v41 }
 0x4c0   :  { %v535_v49 = vpop.permute.xlu1 %534 }
 0x4c1   :  { %v560_v51 = vsel %vm129_vm0, %v535_v49, 0.0 }
 0x4c2   :  { %561 = vadd.xlane.f32.xlu1 %v560_v51 }
 0x4c8   :  { %v537_v52 = vpop.permute.xlu0 %536 }
 0x4c9   :  { %v563_v61 = vsel %vm129_vm0, %v537_v52, 0.0 }
 0x4ca   :  { %564 = vadd.xlane.f32.xlu2 %v563_v61 }
 0x4d0   :  { %v539_v54 = vpop.permute.xlu1 %538 }
 0x4d1   :  { %v566_v59 = vsel %vm129_vm0, %v539_v54, 0.0  ;;  %v1827_v54 = vld [vmem:[%s2202_s4 + $0x20] sm:$0xff] }
 0x4d2   :  { %567 = vadd.xlane.f32.xlu1 %v566_v59 }
 0x4d8   :  { %v541_v50 = vpop.permute.xlu0 %540 }
 0x4d9   :  { %v569_v1 = vsel %vm129_vm0, %v541_v50, 0.0 }
 0x4da   :  { %570 = vadd.xlane.f32.xlu0 %v569_v1  ;;  %558 = vadd.xlane.f32.xlu1 %v557_v2 }
 0x4e0   :  { %v597_v6 = vpop.permute.xlu0 %596  ;;  %v543_v7 = vpop.permute.xlu1 %542 }
 0x4e1   :  { %v615_v10 = vadd.f32 %v597_v6, %v583_v5  ;;  %v572_v11 = vsel %vm129_vm0, %v543_v7, 0.0 }
 0x4e2   :  { %573 = vadd.xlane.f32.xlu0 %v572_v11 }
 0x4e8   :  { %v591_v13 = vpop.permute.xlu0 %590  ;;  %v601_v17 = vpop.permute.xlu1 %600 }
 0x4f0   :  { %v545_v14 = vpop.permute.xlu0 %544  ;;  %v593_v18 = vpop.permute.xlu1 %592 }
 0x4f1   :  { %v575_v15 = vsel %vm129_vm0, %v545_v14, 0.0 }
 0x4f2   :  { %576 = vadd.xlane.f32.xlu2 %v575_v15 }
 0x4f6   :  { %588 = vrot.lane.b32.xlu0 %v1748_v48, %s1461_s21  ;;  %v1816_v48 = vld [vmem:[%s2201_s3 + $0x18] sm:$0xff] }
 0x4f7   :  { %v581_v41 = vmul.f32 %v1686_v57, %v1816_v48  ;;  %v1833_v57 = vld [vmem:[%s2202_s4 + $0x18] sm:$0xff] }
 0x4f9   :  { %v613_v52 = vadd.f32 %v593_v18, %v581_v41  ;;  %v1840_v18 = vld [vmem:[%s2202_s4 + $0x30] sm:$0xff]  ;;  %v580_v41 = vmul.f32 %v1684_v55, %v1845_v58 }
 0x50a   :  { %586 = vrot.lane.b32.xlu2 %v1744_v47, %s1461_s21  ;;  %v582_v47 = vmul.f32 %v1694_v63, %v1811_v27 }
 0x50c   :  { %v614_v42 = vadd.f32 %v595_v19, %v582_v47 }
 0x51b   :  { %v1820_v32 = vpop.xlane.xlu0 %555 }
 0x535   :  { %v562_v24 = vpop.xlane.xlu1 %561 }
 0x53d   :  { %v565_v29 = vpop.xlane.xlu2 %564 }
 0x53e   :  { %v621_v49 = vmul.f32 2.0, %v565_v29 }
 0x540   :  { %v629_v59 = vsub.f32 %v613_v52, %v621_v49  ;;  %v612_v49 = vadd.f32 %v591_v13, %v580_v41  ;;  %v1866_v13 = vld [vmem:[%s2201_s3 + $0x8] sm:$0xff] }
 0x542   :  { %v637_v2 = vmax.f32 %v629_v59, 0.0 }
 0x544   :  { %v645_v5 = vmul.f32 %v637_v2, %v1833_v57 }
 0x545   :  { %v568_v40 = vpop.xlane.xlu1 %567 }
 0x546   :  { %v622_v51 = vmul.f32 2.0, %v568_v40 }
 0x548   :  { %v630_v61 = vsub.f32 %v614_v42, %v622_v51  ;;  %v620_v42 = vmul.f32 2.0, %v562_v24  ;;  %v1853_v51 = vld [vmem:[%s2202_s4 + $0x28] sm:$0xff] }
 0x54a   :  { %v638_v50 = vmax.f32 %v630_v61, 0.0  ;;  %v628_v52 = vsub.f32 %v612_v49, %v620_v42  ;;  %v618_v49 = vmul.f32 2.0, %v1820_v32 }
 0x54c   :  { %v646_v63 = vmul.f32 %v638_v50, %v1827_v54  ;;  %v636_v24 = vmax.f32 %v628_v52, 0.0  ;;  %v1893_v52 = vld [vmem:[%s2202_s4 + $0x8] sm:$0xff] }
 0x54d   :  { %v571_v1 = vpop.xlane.xlu0 %570  ;;  %v559_v2 = vpop.xlane.xlu1 %558 }
 0x54e   :  { %1429 = vtanh.f32 %v646_v63  ;;  %v623_v11 = vmul.f32 2.0, %v571_v1  ;;  %v1871_v1 = vld [vmem:[%s2202_s4 + $0x10] sm:$0xff] }
 0x54f   :  { %1431 = vtanh.f32 %v645_v5 }
 0x550   :  { %v631_v19 = vsub.f32 %v615_v10, %v623_v11  ;;  %v1858_v10 = vld [vmem:[%s2201_s3 + $0x38] sm:$0xff]  ;;  %v1878_v11 = vld [vmem:[%s2201_s3] sm:$0xff] }
 0x551   :  { %v585_v55 = vmul.f32 %v1696_v9, %v1858_v10  ;;  %v579_v9 = vmul.f32 %v1710_v39, %v1866_v13  ;;  %v578_v39 = vmul.f32 %v1692_v62, %v1878_v11  ;;  %v1899_v62 = vld [vmem:[%s2202_s4] sm:$0xff] }
 0x553   :  { %v617_v63 = vadd.f32 %v601_v17, %v585_v55  ;;  %v644_v17 = vmul.f32 %v636_v24, %v1871_v1 }
 0x554   :  { %v1430_v6 = vpop.eup %1429 }
 0x555   :  { %v574_v7 = vpop.xlane.xlu0 %573  ;;  %688 = vperm.xlu0 %1405, %v1430_v6   ;;  %v1432_v47 = vpop.eup %1431 }
 0x556   :  { %v624_v14 = vmul.f32 2.0, %v574_v7 }
 0x558   :  { %v632_v15 = vsub.f32 %v1785_v34, %v624_v14  ;;  %v639_v34 = vmax.f32 %v631_v19, 0.0  ;;  %v619_v14 = vmul.f32 2.0, %v559_v2 }
 0x55a   :  { %v640_v29 = vmax.f32 %v632_v15, 0.0  ;;  %v647_v61 = vmul.f32 %v639_v34, %v1853_v51  ;;  %v1884_v15 = vld [vmem:[%s2202_s4 + $0x38] sm:$0xff] }
 0x55c   :  { %v648_v40 = vmul.f32 %v640_v29, %v1840_v18 }
 0x55d   :  { %683 = vperm.xlu0 %1405, %v1432_v47  }
 0x55e   :  { %1433 = vtanh.f32 %v648_v40 }
 0x55f   :  { %1435 = vtanh.f32 %v647_v61 }
 0x560   :  { %1437 = vtanh.f32 %v644_v17  ;;  %v664_v17 = vsub.f32 %v1653_v16, %v1549_v20  ;;  %v660_v16 = vsub.f32 %v1629_v0, %v1563_v30  ;;  %v659_v0 = vsub.f32 %v1623_v60, %v1565_v31 }
 0x564   :  { %v1434_v59 = vpop.eup %1433 }
 0x565   :  { %v577_v50 = vpop.xlane.xlu2 %576  ;;  %698 = vperm.xlu2 %1403, %v1434_v59   ;;  %v1436_v40 = vpop.eup %1435 }
 0x566   :  { %v625_v5 = vmul.f32 2.0, %v577_v50  ;;  %v1438_v50 = vpop.eup %1437 }
 0x568   :  { %v633_v6 = vsub.f32 %v617_v63, %v625_v5  ;;  %v589_v7 = vpop.permute.xlu0 %588 }
 0x569   :  { %v611_v19 = vadd.f32 %v589_v7, %v579_v9 }
 0x56a   :  { %v641_v29 = vmax.f32 %v633_v6, 0.0 }
 0x56b   :  { %v627_v47 = vsub.f32 %v611_v19, %v619_v14  ;;  %v663_v14 = vsub.f32 %v1647_v12, %v1553_v23  ;;  %v661_v12 = vsub.f32 %v1635_v4, %v1559_v28  ;;  %v658_v4 = vsub.f32 %v1617_v56, %v1569_v33 }
 0x56c   :  { %v649_v41 = vmul.f32 %v641_v29, %v1884_v15 }
 0x56d   :  { %v635_v42 = vmax.f32 %v627_v47, 0.0  ;;  %v587_v34 = vpop.permute.xlu2 %586  ;;  %693 = vperm.xlu2 %1403, %v1436_v40   ;;  %v662_v47 = vsub.f32 %v1641_v8, %v1557_v26  ;;  %v665_v40 = vsub.f32 %v1659_v22, %v1551_v21 }
 0x56e   :  { %1439 = vtanh.f32 %v649_v41  ;;  %v610_v61 = vadd.f32 %v587_v34, %v578_v39 }
 0x56f   :  { %v643_v55 = vmul.f32 %v635_v42, %v1893_v52 }
 0x570   :  { %v626_v59 = vsub.f32 %v610_v61, %v618_v49 }
 0x571   :  { %1441 = vtanh.f32 %v643_v55 }
 0x572   :  { %v634_v24 = vmax.f32 %v626_v59, 0.0 }
 0x574   :  { %v1440_v63 = vpop.eup %1439  ;;  %v642_v32 = vmul.f32 %v634_v24, %v1899_v62 }
 0x575   :  { %703 = vperm.xlu1 %1404, %v1440_v63   ;;  %678 = vperm.xlu2 %1403, %v1438_v50  }
 0x576   :  { %1443 = vtanh.f32 %v642_v32 }
 0x577   :  { %v1442_v2 = vpop.eup %1441 }
 0x57c   :  { %v1444_v5 = vpop.eup %1443 }
 0x57d   :  { %668 = vperm.xlu2 %1403, %v1444_v5   ;;  %673 = vperm.xlu1 %1404, %v1442_v2  }
 0x5bf   :  { %v699_v9 = vpop.permute.xlu2 %698 }
 0x5c0   :  { %v712_v29 = vmul.f32 %v699_v9, %v664_v17 }
 0x5c2   :  { %v1911_v61 = vadd.f32 %v712_v29, %v1549_v20 }
 0x5c7   :  { %v694_v6 = vpop.permute.xlu2 %693  ;;  %v689_v7 = vpop.permute.xlu0 %688 }
 0x5c8   :  { %v711_v39 = vmul.f32 %v694_v6, %v663_v14  ;;  %v710_v42 = vmul.f32 %v689_v7, %v662_v47 }
 0x5ca   :  { %v1921_v8 = vadd.f32 %v711_v39, %v1553_v23  ;;  %v1924_v22 = vadd.f32 %v710_v42, %v1557_v26 }
 0x5cc   :  { %v724_v32 = vpack.c.bf16 %v1921_v8, %v1924_v22 }
 0x5cf   :  { %v679_v19 = vpop.permute.xlu2 %678  ;;  %v684_v49 = vpop.permute.xlu0 %683 }
 0x5d0   :  { %v708_v55 = vmul.f32 %v679_v19, %v660_v16  ;;  %v709_v24 = vmul.f32 %v684_v49, %v661_v12 }
 0x5d2   :  { %v1933_v23 = vadd.f32 %v708_v55, %v1563_v30  ;;  %v1936_v26 = vadd.f32 %v709_v24, %v1559_v28 }
 0x5d4   :  { %v723_v56 = vpack.c.bf16 %v1936_v26, %v1933_v23 }
 0x5e7   :  { %v704_v41 = vpop.permute.xlu1 %703 }
 0x5e8   :  { %v713_v34 = vmul.f32 %v704_v41, %v665_v40 }
 0x5ea   :  { %v1918_v59 = vadd.f32 %v713_v34, %v1551_v21  ;;  %v669_v21 = vpop.permute.xlu2 %668 }
 0x5eb   :  { %v706_v2 = vmul.f32 %v669_v21, %v658_v4 }
 0x5ec   :  { %v725_v20 = vpack.c.bf16 %v1918_v59, %v1911_v61 }
 0x5ed   :  { %v1946_v60 = vadd.f32 %v706_v2, %v1569_v33 }
 0x5ee   :  { %730 = vmatpush.bf16.msrb.mxu0 %v725_v20 }
 0x5ef   :  { %v674_v50 = vpop.permute.xlu1 %673 }
 0x5f0   :  { %v707_v63 = vmul.f32 %v674_v50, %v659_v0 }
 0x5f2   :  { %731 = vmatpush.bf16.msrb.mxu0 %v724_v32  ;;  %v1941_v5 = vadd.f32 %v707_v63, %v1565_v31 }
 0x5f4   :  { %v722_v28 = vpack.c.bf16 %v1941_v5, %v1946_v60 }
 0x5f6   :  { %732 = vmatpush.bf16.msrb.mxu0 %v723_v56 }
 0x5fa   :  { %733 = vmatpush.bf16.msrb.mxu0 %v722_v28 }
 0x5fd   :  { %1338 = vmatmul.msk.bf16.vlgmr.msrb.gmra.mxu0 %vm203_vm1, %v1576_v35 }
 0x60d   :  { %1339 = vmatmul.msk.bf16.gmra.mxu0 %vm203_vm1, %v1583_v36 }
 0x61d   :  { %1340 = vmatmul.msk.bf16.gmra.mxu0 %vm203_vm1, %v1590_v37 }
 0x62d   :  { %1341 = vmatmul.msk.bf16.gmra.mxu0 %vm203_vm1, %v1597_v38 }
 0x67a   :  { %v735_v30 = vpop.f32.mrf.mxu0 }
 0x682   :  { %v737_v31 = vpop.f32.mrf.mxu0 }
 0x683   :  { %v755_v33 = vpack.c.bf16 %v737_v31, %v735_v30 }
 0x685   :  { %1342 = vmatmul.msk.bf16.vlgmr.msrb.gmra.mxu2 %vm129_vm0, %v755_v33 }
 0x68a   :  { %v740_v9 = vpop.f32.mrf.mxu0 }
 0x692   :  { %v742_v6 = vpop.f32.mrf.mxu0 }
 0x693   :  { %v756_v7 = vpack.c.bf16 %v742_v6, %v740_v9 }
 0x695   :  { %1343 = vmatmul.msk.bf16.gmra.mxu2 %vm129_vm0, %v756_v7 }
 0x69a   :  { %v745_v35 = vpop.f32.mrf.mxu0 }
 0x6a2   :  { %v747_v17 = vpop.f32.mrf.mxu0 }
 0x6a3   :  { %v757_v14 = vpack.c.bf16 %v747_v17, %v745_v35 }
 0x6a5   :  { %1344 = vmatmul.msk.bf16.gmra.mxu2 %vm129_vm0, %v757_v14 }
 0x6aa   :  { %v750_v36 = vpop.f32.mrf.mxu0 }
 0x6b2   :  { %v752_v37 = vpop.f32.mrf.mxu0 }
 0x6b3   :  { %v758_v19 = vpack.c.bf16 %v752_v37, %v750_v36 }
 0x6b5   :  { %1345 = vmatmul.msk.bf16.gmra.mxu2 %vm129_vm0, %v758_v19 }
 0x708   :  { %v780_v38 = vpop.f32.mrf.mxu2 }
 0x709   :  { %v781_v29 = vadd.f32 %v1614_v53, %v780_v38 }
 0x70b   :  { %v1963_v47 = vmax.f32 %v781_v29, 0.0 }
 0x70d   :  { %v808_v40 = vmul.f32 %v1963_v47, %v1963_v47 }
 0x70f   :  { %824 = vrot.lane.b32.xlu0 %v808_v40, %s1461_s21 }
 0x710   :  { %v782_v39 = vpop.f32.mrf.mxu2 }
 0x711   :  { %v783_v41 = vadd.f32 %v1614_v53, %v782_v39 }
 0x713   :  { %v1969_v42 = vmax.f32 %v783_v41, 0.0 }
 0x715   :  { %v809_v34 = vmul.f32 %v1969_v42, %v1969_v42 }
 0x717   :  { %826 = vrot.lane.b32.xlu2 %v809_v34, %s1461_s21 }
 0x718   :  { %v785_v49 = vpop.f32.mrf.mxu2 }
 0x719   :  { %v786_v16 = vadd.f32 %v1614_v53, %v785_v49 }
 0x71b   :  { %v1975_v12 = vmax.f32 %v786_v16, 0.0 }
 0x71d   :  { %v810_v55 = vmul.f32 %v1975_v12, %v1975_v12 }
 0x71f   :  { %828 = vrot.lane.b32.xlu2 %v810_v55, %s1461_s21 }
 0x720   :  { %v787_v24 = vpop.f32.mrf.mxu2 }
 0x721   :  { %v788_v20 = vadd.f32 %v1614_v53, %v787_v24 }
 0x723   :  { %v1981_v0 = vmax.f32 %v788_v20, 0.0 }
 0x725   :  { %v811_v4 = vmul.f32 %v1981_v0, %v1981_v0 }
 0x727   :  { %830 = vrot.lane.b32.xlu1 %v811_v4, %s1461_s21 }
 0x728   :  { %v790_v21 = vpop.f32.mrf.mxu2 }
 0x729   :  { %v791_v50 = vadd.f32 %v1614_v53, %v790_v21 }
 0x72b   :  { %v1987_v63 = vmax.f32 %v791_v50, 0.0 }
 0x72d   :  { %v812_v32 = vmul.f32 %v1987_v63, %v1987_v63 }
 0x72f   :  { %832 = vrot.lane.b32.xlu1 %v812_v32, %s1461_s21  ;;  %v1421_v32 = vpack.i.bf16 %v1969_v42, %v1963_v47 }
 0x730   :  { %v792_v2 = vpop.f32.mrf.mxu2 }
 0x731   :  { %v793_v56 = vadd.f32 %v1614_v53, %v792_v2  ;;  %v1416_v2 = vpack.i.bf16 %v1981_v0, %v1975_v12 }
 0x733   :  { %v1993_v28 = vmax.f32 %v793_v56, 0.0 }
 0x735   :  { %v813_v30 = vmul.f32 %v1993_v28, %v1993_v28  ;;  %v1411_v50 = vpack.i.bf16 %v1993_v28, %v1987_v63 }
 0x737   :  { %834 = vrot.lane.b32.xlu0 %v813_v30, %s1461_s21 }
 0x738   :  { %v795_v31 = vpop.f32.mrf.mxu2 }
 0x739   :  { %v796_v33 = vadd.f32 %v1614_v53, %v795_v31 }
 0x73b   :  { %v1999_v9 = vmax.f32 %v796_v33, 0.0 }
 0x73d   :  { %v814_v6 = vmul.f32 %v1999_v9, %v1999_v9 }
 0x73f   :  { %836 = vrot.lane.b32.xlu0 %v814_v6, %s1461_s21 }
 0x740   :  { %v797_v7 = vpop.f32.mrf.mxu2 }
 0x741   :  { %v798_v35 = vadd.f32 %v1614_v53, %v797_v7 }
 0x743   :  { %v2005_v17 = vmax.f32 %v798_v35, 0.0 }
 0x745   :  { %v1406_v14 = vpack.i.bf16 %v2005_v17, %v1999_v9  ;;  %v815_v36 = vmul.f32 %v2005_v17, %v2005_v17 }
 0x747   :  { %1407 = vrot.lane.b32.xlu2 %v1406_v14, %s1461_s21 }
 0x74f   :  { %838 = vrot.lane.b32.xlu2 %v815_v36, %s1461_s21 }
 0x771   :  { %v827_v37 = vpop.permute.xlu2 %826 }
 0x772   :  { %v851_v56 = vsel %vm129_vm0, %v827_v37, 0.0 }
 0x779   :  { %v829_v19 = vpop.permute.xlu2 %828 }
 0x77a   :  { %v854_v21 = vsel %vm129_vm0, %v829_v19, 0.0 }
 0x781   :  { %v825_v29 = vpop.permute.xlu0 %824 }
 0x782   :  { %v848_v20 = vsel %vm129_vm0, %v825_v29, 0.0 }
 0x799   :  { %v831_v38 = vpop.permute.xlu1 %830 }
 0x79a   :  { %v857_v16 = vsel %vm129_vm0, %v831_v38, 0.0 }
 0x7a1   :  { %v833_v40 = vpop.permute.xlu1 %832  ;;  %v1408_v39 = vpop.permute.xlu2 %1407 }
 0x7a2   :  { %v860_v53 = vsel %vm129_vm0, %v833_v40, 0.0  ;;  %v1410_v33 = vunpack.i.h.bf16 %v1408_v39  ;;  %v1409_v6 = vunpack.i.l.bf16 %v1408_v39 }
 0x7a3   :  { %861 = vadd.xlane.f32.xlu2 %v860_v53 }
 0x7a9   :  { %v835_v41 = vpop.permute.xlu0 %834  ;;  %v839_v34 = vpop.permute.xlu2 %838 }
 0x7aa   :  { %v863_v49 = vsel %vm129_vm0, %v835_v41, 0.0  ;;  %v869_v55 = vsel %vm129_vm0, %v839_v34, 0.0 }
 0x7ab   :  { %864 = vadd.xlane.f32.xlu1 %v863_v49  ;;  %858 = vadd.xlane.f32.xlu2 %v857_v16 }
 0x7ac   :  { %870 = vadd.xlane.f32.xlu0 %v869_v55 }
 0x7b1   :  { %v837_v24 = vpop.permute.xlu0 %836 }
 0x7b2   :  { %v866_v4 = vsel %vm129_vm0, %v837_v24, 0.0 }
 0x7b3   :  { %849 = vadd.xlane.f32.xlu2 %v848_v20  ;;  %867 = vadd.xlane.f32.xlu1 %v866_v4 }
 0x7bb   :  { %855 = vadd.xlane.f32.xlu1 %v854_v21 }
 0x7c0   :  { %1412 = vrot.lane.b32.xlu0 %v1411_v50, %s1461_s21 }
 0x7cb   :  { %1422 = vrot.lane.b32.xlu2 %v1421_v32, %s1461_s21 }
 0x7d4   :  { %1417 = vrot.lane.b32.xlu1 %v1416_v2, %s1461_s21 }
 0x7ea   :  { %852 = vadd.xlane.f32.xlu0 %v851_v56 }
 0x816   :  { %v2040_v29 = vpop.xlane.xlu2 %861 }
 0x81e   :  { %v2030_v30 = vpop.xlane.xlu1 %864  ;;  %v859_v34 = vpop.xlane.xlu2 %858 }
 0x81f   :  { %v2032_v31 = vpop.xlane.xlu0 %870 }
 0x820   :  { %v911_v35 = vsel %vm129_vm0, %v1410_v33, %v2032_v31 }
 0x826   :  { %v2034_v7 = vpop.xlane.xlu1 %867  ;;  %v850_v21 = vpop.xlane.xlu2 %849 }
 0x827   :  { %v910_v14 = vsel %vm129_vm0, %v1409_v6, %v2034_v7 }
 0x828   :  { %v915_v36 = vpack.c.bf16 %v911_v35, %v910_v14 }
 0x82a   :  { %920 = vmatpush.bf16.msrb.mxu1 %v915_v36 }
 0x82e   :  { %v856_v41 = vpop.xlane.xlu1 %855  ;;  %v1423_v50 = vpop.permute.xlu2 %1422 }
 0x82f   :  { %v1424_v32 = vunpack.i.l.bf16 %v1423_v50  ;;  %v1425_v2 = vunpack.i.h.bf16 %v1423_v50 }
 0x831   :  { %v904_v6 = vsel %vm129_vm0, %v1424_v32, %v850_v21 }
 0x832   :  { %v1413_v19 = vpop.permute.xlu0 %1412 }
 0x833   :  { %v1415_v38 = vunpack.i.h.bf16 %v1413_v19  ;;  %v1414_v37 = vunpack.i.l.bf16 %v1413_v19 }
 0x835   :  { %v908_v40 = vsel %vm129_vm0, %v1414_v37, %v2040_v29  ;;  %v909_v39 = vsel %vm129_vm0, %v1415_v38, %v2030_v30 }
 0x836   :  { %v914_v53 = vpack.c.bf16 %v909_v39, %v908_v40  ;;  %v1044_v40 = vmul.f32 %v859_v34, %v1816_v48  ;;  %v1043_v48 = vmul.f32 %v856_v41, %v1845_v58 }
 0x838   :  { %921 = vmatpush.bf16.msrb.mxu1 %v914_v53 }
 0x846   :  { %v1418_v49 = vpop.permute.xlu1 %1417 }
 0x847   :  { %v1420_v16 = vunpack.i.h.bf16 %v1418_v49  ;;  %v1419_v55 = vunpack.i.l.bf16 %v1418_v49 }
 0x849   :  { %v906_v24 = vsel %vm129_vm0, %v1419_v55, %v856_v41  ;;  %v907_v20 = vsel %vm129_vm0, %v1420_v16, %v859_v34  ;;  %v1041_v55 = vmul.f32 %v850_v21, %v1878_v11 }
 0x84a   :  { %v913_v4 = vpack.c.bf16 %v907_v20, %v906_v24 }
 0x84c   :  { %922 = vmatpush.bf16.msrb.mxu1 %v913_v4 }
 0x85d   :  { %v2048_v56 = vpop.xlane.xlu0 %852 }
 0x85e   :  { %v905_v33 = vsel %vm129_vm0, %v1425_v2, %v2048_v56 }
 0x85f   :  { %v912_v35 = vpack.c.bf16 %v905_v33, %v904_v6 }
 0x861   :  { %923 = vmatpush.bf16.msrb.mxu1 %v912_v35 }
 0x864   :  { %1346 = vmatmul.msk.bf16.vlgmr.msrb.gmra.mxu1 %vm203_vm1, %v1719_v43 }
 0x874   :  { %1347 = vmatmul.msk.bf16.gmra.mxu1 %vm203_vm1, %v1726_v44 }
 0x884   :  { %1348 = vmatmul.msk.bf16.gmra.mxu1 %vm203_vm1, %v1733_v45 }
 0x894   :  { %1349 = vmatmul.msk.bf16.gmra.mxu1 %vm203_vm1, %v1740_v46 }
 0x8e1   :  { %v925_v14 = vpop.f32.mrf.mxu1 }
 0x8e2   :  { %953 = vrot.lane.b32.xlu1 %v925_v14, %s1462_s28 }
 0x8e9   :  { %v927_v36 = vpop.f32.mrf.mxu1 }
 0x8ea   :  { %1049 = vrot.lane.b32.xlu1 %v925_v14, %s1461_s21 }
 0x8f1   :  { %v930_v19 = vpop.f32.mrf.mxu1 }
 0x8f2   :  { %955 = vrot.lane.b32.xlu1 %v927_v36, %s1462_s28  ;;  %1053 = vrot.lane.b32.xlu0 %v930_v19, %s1461_s21 }
 0x8f3   :  { %957 = vrot.lane.b32.xlu2 %v930_v19, %s1462_s28 }
 0x8f9   :  { %v932_v43 = vpop.f32.mrf.mxu1 }
 0x8fa   :  { %1051 = vrot.lane.b32.xlu1 %v927_v36, %s1461_s21 }
 0x8fb   :  { %1055 = vrot.lane.b32.xlu2 %v932_v43, %s1461_s21 }
 0x901   :  { %v935_v44 = vpop.f32.mrf.mxu1 }
 0x902   :  { %959 = vrot.lane.b32.xlu1 %v932_v43, %s1462_s28 }
 0x903   :  { %961 = vrot.lane.b32.xlu2 %v935_v44, %s1462_s28 }
 0x909   :  { %v937_v45 = vpop.f32.mrf.mxu1 }
 0x90a   :  { %963 = vrot.lane.b32.xlu0 %v937_v45, %s1462_s28 }
 0x911   :  { %v940_v46 = vpop.f32.mrf.mxu1 }
 0x912   :  { %965 = vrot.lane.b32.xlu1 %v940_v46, %s1462_s28 }
 0x919   :  { %v942_v38 = vpop.f32.mrf.mxu1 }
 0x91a   :  { %967 = vrot.lane.b32.xlu2 %v942_v38, %s1462_s28 }
 0x94d   :  { %v958_v37 = vpop.permute.xlu2 %957 }
 0x94e   :  { %v979_v20 = vmul.f32 %v958_v37, %v1975_v12 }
 0x954   :  { %v954_v39 = vpop.permute.xlu1 %953 }
 0x955   :  { %v977_v53 = vmul.f32 %v954_v39, %v1963_v47  ;;  %v1056_v49 = vpop.permute.xlu2 %1055 }
 0x956   :  { %v2075_v16 = vadd.f32 %v1056_v49, %v1044_v40 }
 0x957   :  { %993 = vrot.lane.b32.xlu1 %v977_v53, %s1461_s21 }
 0x95c   :  { %v1050_v24 = vpop.permute.xlu1 %1049 }
 0x95d   :  { %v1073_v4 = vadd.f32 %v1050_v24, %v1041_v55  ;;  %v962_v50 = vpop.permute.xlu2 %961 }
 0x95e   :  { %v981_v32 = vmul.f32 %v962_v50, %v1987_v63 }
 0x95f   :  { %997 = vrot.lane.b32.xlu1 %v979_v20, %s1461_s21 }
 0x960   :  { %1001 = vrot.lane.b32.xlu0 %v981_v32, %s1461_s21 }
 0x964   :  { %v956_v34 = vpop.permute.xlu1 %955  ;;  %v1054_v2 = vpop.permute.xlu0 %1053 }
 0x965   :  { %v978_v33 = vmul.f32 %v956_v34, %v1969_v42  ;;  %v1075_v6 = vadd.f32 %v1054_v2, %v1043_v48 }
 0x967   :  { %995 = vrot.lane.b32.xlu2 %v978_v33, %s1461_s21  ;;  %v1042_v33 = vmul.f32 %v2048_v56, %v1866_v13 }
 0x96c   :  { %v1052_v11 = vpop.permute.xlu1 %1051 }
 0x974   :  { %v960_v21 = vpop.permute.xlu1 %959  ;;  %v968_v41 = vpop.permute.xlu2 %967 }
 0x975   :  { %v980_v35 = vmul.f32 %v960_v21, %v1981_v0  ;;  %v984_v43 = vmul.f32 %v968_v41, %v2005_v17 }
 0x977   :  { %999 = vrot.lane.b32.xlu2 %v980_v35, %s1461_s21 }
 0x97c   :  { %v964_v14 = vpop.permute.xlu0 %963 }
 0x97d   :  { %v982_v36 = vmul.f32 %v964_v14, %v1993_v28 }
 0x97f   :  { %1003 = vrot.lane.b32.xlu1 %v982_v36, %s1461_s21  ;;  %v1074_v36 = vadd.f32 %v1052_v11, %v1042_v33  ;;  %v1046_v33 = vmul.f32 %v2030_v30, %v1798_v3  ;;  %v1048_v3 = vmul.f32 %v2032_v31, %v1858_v10 }
 0x984   :  { %v966_v19 = vpop.permute.xlu1 %965 }
 0x985   :  { %v983_v58 = vmul.f32 %v966_v19, %v1999_v9 }
 0x987   :  { %1005 = vrot.lane.b32.xlu1 %v983_v58, %s1461_s21 }
 0x98f   :  { %1007 = vrot.lane.b32.xlu1 %v984_v43, %s1461_s21 }
 0x9c1   :  { %v996_v37 = vpop.permute.xlu2 %995 }
 0x9c2   :  { %v1020_v40 = vsel %vm129_vm0, %v996_v37, 0.0 }
 0x9c3   :  { %1021 = vadd.xlane.f32.xlu0 %v1020_v40 }
 0x9c9   :  { %v994_v39 = vpop.permute.xlu1 %993 }
 0x9ca   :  { %v1017_v53 = vsel %vm129_vm0, %v994_v39, 0.0 }
 0x9cb   :  { %1018 = vadd.xlane.f32.xlu2 %v1017_v53 }
 0x9d1   :  { %v998_v49 = vpop.permute.xlu1 %997  ;;  %v1000_v50 = vpop.permute.xlu2 %999 }
 0x9d2   :  { %v1023_v55 = vsel %vm129_vm0, %v998_v49, 0.0  ;;  %v1002_v20 = vpop.permute.xlu0 %1001  ;;  %v1026_v48 = vsel %vm129_vm0, %v1000_v50, 0.0 }
 0x9d3   :  { %1024 = vadd.xlane.f32.xlu1 %v1023_v55  ;;  %v1029_v32 = vsel %vm129_vm0, %v1002_v20, 0.0 }
 0x9d7   :  { %1059 = vrot.lane.b32.xlu0 %v937_v45, %s1461_s21 }
 0x9df   :  { %1063 = vrot.lane.b32.xlu0 %v942_v38, %s1461_s21 }
 0x9e3   :  { %1061 = vrot.lane.b32.xlu2 %v940_v46, %s1461_s21 }
 0x9ec   :  { %1057 = vrot.lane.b32.xlu1 %v935_v44, %s1461_s21 }
 0x9f1   :  { %v1004_v24 = vpop.permute.xlu1 %1003 }
 0x9f2   :  { %v1032_v2 = vsel %vm129_vm0, %v1004_v24, 0.0 }
 0x9f9   :  { %v1006_v34 = vpop.permute.xlu1 %1005 }
 0x9fa   :  { %v1035_v45 = vsel %vm129_vm0, %v1006_v34, 0.0 }
 0xa01   :  { %v1008_v38 = vpop.permute.xlu1 %1007 }
 0xa02   :  { %v1038_v46 = vsel %vm129_vm0, %v1008_v38, 0.0 }
 0xa09   :  { %1030 = vadd.xlane.f32.xlu0 %v1029_v32 }
 0xa0c   :  { %1027 = vadd.xlane.f32.xlu2 %v1026_v48 }
 0xa14   :  { %1033 = vadd.xlane.f32.xlu2 %v1032_v2 }
 0xa16   :  { %1036 = vadd.xlane.f32.xlu1 %v1035_v45 }
 0xa1c   :  { %1039 = vadd.xlane.f32.xlu2 %v1038_v46 }
 0xa36   :  { %v1022_v44 = vpop.xlane.xlu0 %1021 }
 0xa37   :  { %v1082_v21 = vmul.f32 2.0, %v1022_v44 }
 0xa39   :  { %v1090_v58 = vsub.f32 %v1074_v36, %v1082_v21 }
 0xa3b   :  { %v1098_v37 = vmax.f32 %v1090_v58, 0.0 }
 0xa3d   :  { %v1106_v49 = vmul.f32 %v1098_v37, %v1893_v52 }
 0xa3e   :  { %v1019_v35 = vpop.xlane.xlu2 %1018 }
 0xa3f   :  { %v1081_v14 = vmul.f32 2.0, %v1019_v35 }
 0xa41   :  { %v1089_v19 = vsub.f32 %v1073_v4, %v1081_v14 }
 0xa43   :  { %v1097_v41 = vmax.f32 %v1089_v19, 0.0 }
 0xa45   :  { %v1105_v43 = vmul.f32 %v1097_v41, %v1899_v62 }
 0xa46   :  { %v1025_v40 = vpop.xlane.xlu1 %1024  ;;  %v1062_v20 = vpop.permute.xlu2 %1061 }
 0xa47   :  { %1445 = vtanh.f32 %v1105_v43  ;;  %v1083_v39 = vmul.f32 2.0, %v1025_v40 }
 0xa48   :  { %1447 = vtanh.f32 %v1106_v49 }
 0xa49   :  { %v1091_v53 = vsub.f32 %v1075_v6, %v1083_v39  ;;  %v1060_v11 = vpop.permute.xlu0 %1059  ;;  %v1045_v6 = vmul.f32 %v2040_v29, %v1811_v27  ;;  %v1047_v27 = vmul.f32 %v2034_v7, %v1780_v25 }
 0xa4a   :  { %v1078_v29 = vadd.f32 %v1060_v11, %v1046_v33 }
 0xa4b   :  { %v1099_v55 = vmax.f32 %v1091_v53, 0.0  ;;  %v1079_v19 = vadd.f32 %v1062_v20, %v1047_v27 }
 0xa4d   :  { %v1446_v24 = vpop.eup %1445  ;;  %v1107_v13 = vmul.f32 %v1099_v55, %v1871_v1 }
 0xa4e   :  { %1131 = vperm.xlu0 %1405, %v1446_v24   ;;  %v1448_v56 = vpop.eup %1447 }
 0xa4f   :  { %1449 = vtanh.f32 %v1107_v13 }
 0xa51   :  { %v1064_v62 = vpop.permute.xlu0 %1063 }
 0xa52   :  { %v1080_v7 = vadd.f32 %v1064_v62, %v1048_v3 }
 0xa55   :  { %v1450_v4 = vpop.eup %1449 }
 0xa56   :  { %1141 = vperm.xlu2 %1403, %v1450_v4   ;;  %1136 = vperm.xlu0 %1405, %v1448_v56   ;;  %v1122_v4 = vsub.f32 %v1969_v42, %v1941_v5 }
 0xa5e   :  { %v1058_v50 = vpop.permute.xlu1 %1057 }
 0xa5f   :  { %v1077_v52 = vadd.f32 %v1058_v50, %v1045_v6 }
 0xa7c   :  { %v1031_v32 = vpop.xlane.xlu0 %1030 }
 0xa7d   :  { %v1085_v48 = vmul.f32 2.0, %v1031_v32 }
 0xa7f   :  { %v1093_v34 = vsub.f32 %v1077_v52, %v1085_v48  ;;  %v1028_v2 = vpop.xlane.xlu2 %1027  ;;  %v1123_v52 = vsub.f32 %v1975_v12, %v1933_v23  ;;  %v1126_v12 = vsub.f32 %v1993_v28, %v1921_v8 }
 0xa80   :  { %v1084_v1 = vmul.f32 2.0, %v1028_v2 }
 0xa81   :  { %v1101_v45 = vmax.f32 %v1093_v34, 0.0 }
 0xa82   :  { %v1092_v38 = vsub.f32 %v2075_v16, %v1084_v1 }
 0xa83   :  { %v1109_v46 = vmul.f32 %v1101_v45, %v1827_v54  ;;  %v1125_v45 = vsub.f32 %v1987_v63, %v1924_v22  ;;  %v1128_v63 = vsub.f32 %v2005_v17, %v1918_v59 }
 0xa84   :  { %v1100_v44 = vmax.f32 %v1092_v38, 0.0 }
 0xa85   :  { %1451 = vtanh.f32 %v1109_v46 }
 0xa86   :  { %v1108_v21 = vmul.f32 %v1100_v44, %v1833_v57 }
 0xa87   :  { %v1034_v35 = vpop.xlane.xlu2 %1033 }
 0xa88   :  { %1453 = vtanh.f32 %v1108_v21  ;;  %v1086_v14 = vmul.f32 2.0, %v1034_v35  ;;  %v1127_v21 = vsub.f32 %v1999_v9, %v1911_v61 }
 0xa89   :  { %v1037_v36 = vpop.xlane.xlu1 %1036 }
 0xa8a   :  { %v1094_v58 = vsub.f32 %v1078_v29, %v1086_v14  ;;  %v1087_v16 = vmul.f32 2.0, %v1037_v36 }
 0xa8b   :  { %v1452_v41 = vpop.eup %1451 }
 0xa8c   :  { %v1102_v54 = vmax.f32 %v1094_v58, 0.0  ;;  %v1095_v43 = vsub.f32 %v1079_v19, %v1087_v16  ;;  %1151 = vperm.xlu0 %1405, %v1452_v41  }
 0xa8e   :  { %v1454_v37 = vpop.eup %1453  ;;  %v1110_v57 = vmul.f32 %v1102_v54, %v1853_v51  ;;  %v1103_v30 = vmax.f32 %v1095_v43, 0.0  ;;  %v1379_v51 = vld [vmem:[%s2203_s9 + $0x8] sm:$0xff] }
 0xa8f   :  { %1146 = vperm.xlu1 %1404, %v1454_v37   ;;  %v1040_v25 = vpop.xlane.xlu2 %1039  ;;  %1222 = vmatpush.bf16.msrb.mxu3 %v1379_v51 }
 0xa90   :  { %1455 = vtanh.f32 %v1110_v57  ;;  %v1111_v40 = vmul.f32 %v1103_v30, %v1840_v18  ;;  %v1088_v39 = vmul.f32 2.0, %v1040_v25  ;;  %v1378_v18 = vld [vmem:[%s2203_s9] sm:$0xff] }
 0xa92   :  { %1457 = vtanh.f32 %v1111_v40  ;;  %v1096_v53 = vsub.f32 %v1080_v7, %v1088_v39 }
 0xa93   :  { %1223 = vmatpush.bf16.msrb.mxu3 %v1378_v18 }
 0xa94   :  { %v1104_v49 = vmax.f32 %v1096_v53, 0.0 }
 0xa96   :  { %v1456_v55 = vpop.eup %1455  ;;  %v1112_v24 = vmul.f32 %v1104_v49, %v1884_v15  ;;  %v1121_v15 = vsub.f32 %v1963_v47, %v1946_v60  ;;  %v1124_v47 = vsub.f32 %v1981_v0, %v1936_v26 }
 0xa97   :  { %1156 = vperm.xlu2 %1403, %v1456_v55  }
 0xa98   :  { %v1458_v13 = vpop.eup %1457  ;;  %1459 = vtanh.f32 %v1112_v24 }
 0xa99   :  { %1161 = vperm.xlu0 %1405, %v1458_v13  }
 0xa9e   :  { %v1460_v10 = vpop.eup %1459 }
 0xa9f   :  { %1166 = vperm.xlu2 %1403, %v1460_v10  }
 0xab0   :  { %v1142_v32 = vpop.permute.xlu2 %1141 }
 0xab1   :  { %v1171_v48 = vmul.f32 %v1142_v32, %v1123_v52 }
 0xab3   :  { %v1179_v42 = vadd.f32 %v1171_v48, %v1933_v23 }
 0xac0   :  { %v1132_v31 = vpop.permute.xlu0 %1131 }
 0xac1   :  { %v1169_v56 = vmul.f32 %v1132_v31, %v1121_v15 }
 0xac3   :  { %v1177_v20 = vadd.f32 %v1169_v56, %v1946_v60 }
 0xac8   :  { %v1137_v11 = vpop.permute.xlu0 %1136 }
 0xac9   :  { %v1170_v62 = vmul.f32 %v1137_v11, %v1122_v4 }
 0xacb   :  { %v1178_v50 = vadd.f32 %v1170_v62, %v1941_v5 }
 0xacd   :  { %v1185_v6 = vpack.c.bf16 %v1178_v50, %v1177_v20 }
 0xacf   :  { %1358 = vmatmul.msk.bf16.vlgmr.msrb.gmra.mxu3 %vm129_vm0, %v1185_v6 }
 0xaf1   :  { %v1157_v38 = vpop.permute.xlu2 %1156 }
 0xaf2   :  { %v1174_v44 = vmul.f32 %v1157_v38, %v1126_v12 }
 0xaf4   :  { %v1182_v33 = vadd.f32 %v1174_v44, %v1921_v8  ;;  %v1428_v8 = vld [vmem:[%s2204_s10] ss:$0 sm:$0xff] }
 0xaf9   :  { %v1167_v35 = vpop.permute.xlu2 %1166 }
 0xafa   :  { %v1176_v29 = vmul.f32 %v1167_v35, %v1128_v63 }
 0xafc   :  { %v1184_v14 = vadd.f32 %v1176_v29, %v1918_v59 }
 0xafe   :  { %v1152_v5 = vpop.permute.xlu0 %1151 }
 0xaff   :  { %v1173_v46 = vmul.f32 %v1152_v5, %v1125_v45 }
 0xb01   :  { %v1147_v34 = vpop.permute.xlu1 %1146  ;;  %v1181_v0 = vadd.f32 %v1173_v46, %v1924_v22 }
 0xb02   :  { %v1172_v2 = vmul.f32 %v1147_v34, %v1124_v47 }
 0xb03   :  { %v1187_v23 = vpack.c.bf16 %v1182_v33, %v1181_v0 }
 0xb04   :  { %v1180_v1 = vadd.f32 %v1172_v2, %v1936_v26 }
 0xb06   :  { %v1186_v60 = vpack.c.bf16 %v1180_v1, %v1179_v42 }
 0xb08   :  { %1359 = vmatmul.msk.bf16.gmra.mxu3 %vm129_vm0, %v1186_v60 }
 0xb0b   :  { %v1162_v26 = vpop.permute.xlu0 %1161 }
 0xb0c   :  { %v1175_v27 = vmul.f32 %v1162_v26, %v1127_v21 }
 0xb0e   :  { %v1183_v28 = vadd.f32 %v1175_v27, %v1911_v61 }
 0xb10   :  { %v1188_v22 = vpack.c.bf16 %v1184_v14, %v1183_v28 }
 0xb18   :  { %1360 = vmatmul.msk.bf16.gmra.mxu3 %vm129_vm0, %v1187_v23 }
 0xb28   :  { %1361 = vmatmul.msk.bf16.gmra.mxu3 %vm129_vm0, %v1188_v22 }
 0xb52   :  { %v1225_v36 = vpop.f32.mrf.mxu3 }
 0xb53   :  { %v1226_v9 = vadd.f32 %v1428_v8, %v1225_v36 }
 0xb55   :  { %1246 = vst.msk [vmem:[%s2205_s11] sm:$0xff] %vm1245_vm2, %v1226_v9 }
 0xb5a   :  { %v1227_v17 = vpop.f32.mrf.mxu3 }
 0xb5b   :  { %v1228_v19 = vadd.f32 %v1428_v8, %v1227_v17 }
 0xb5d   :  { %1247 = vst.msk [vmem:[%s2205_s11 + $0x8] sm:$0xff] %vm1245_vm2, %v1228_v19 }
 0xb8b   :  { %v1230_v61 = vpop.f32.mrf.mxu3 }
 0xb8c   :  { %v1231_v59 = vadd.f32 %v1428_v8, %v1230_v61 }
 0xb8e   :  { %1248 = vst.msk [vmem:[%s2205_s11 + $0x10] sm:$0xff] %vm1245_vm2, %v1231_v59 }
 0xb93   :  { %v1232_v58 = vpop.f32.mrf.mxu3 }
 0xb94   :  { %v1233_v16 = vadd.f32 %v1428_v8, %v1232_v58 }
 0xb96   :  { %1249 = vst.msk [vmem:[%s2205_s11 + $0x18] sm:$0xff] %vm1245_vm2, %v1233_v16 }
 0xb9b   :  { %v1235_v41 = vpop.f32.mrf.mxu3 }
 0xb9c   :  { %v1236_v54 = vadd.f32 %v1428_v8, %v1235_v41 }
 0xb9e   :  { %1250 = vst.msk [vmem:[%s2205_s11 + $0x20] sm:$0xff] %vm1245_vm2, %v1236_v54 }
 0xba3   :  { %v1237_v43 = vpop.f32.mrf.mxu3 }
 0xba4   :  { %v1238_v37 = vadd.f32 %v1428_v8, %v1237_v43 }
 0xba6   :  { %1251 = vst.msk [vmem:[%s2205_s11 + $0x28] sm:$0xff] %vm1245_vm2, %v1238_v37 }
 0xbab   :  { %v1240_v3 = vpop.f32.mrf.mxu3 }
 0xbac   :  { %v1241_v57 = vadd.f32 %v1428_v8, %v1240_v3 }
 0xbae   :  { %1252 = vst.msk [vmem:[%s2205_s11 + $0x30] sm:$0xff] %vm1245_vm2, %v1241_v57 }
 0xbb3   :  { %v1242_v30 = vpop.f32.mrf.mxu3 }
 0xbb4   :  { %v1243_v25 = vadd.f32 %v1428_v8, %v1242_v30 }
 0xbb6   :  { %1253 = vst.msk [vmem:[%s2205_s11 + $0x38] sm:$0xff] %vm1245_vm2, %v1243_v25 }

</bundles_post_ra>
